<compile_context>
chip_gen: v5e
topology: v5e:2x2
jax: 0.10.0
libtpu: 0.0.40
codegen_flags: <defaults>
</compile_context>

<pallas_src>
import jax
import jax.numpy as jnp
from jax import lax
from jax.experimental import pallas as pl
from jax.experimental.pallas import tpu as pltpu


def _round_up(x, m):
    return ((x + m - 1) // m) * m


def _edge_tiling(size, tile):
    """128-aligned edge tiling: one block if it fits, else `tile`-sized blocks."""
    tile = _round_up(tile, 128)
    if size <= tile:
        p = _round_up(size, 128)
        return p, p
    return tile, _round_up(size, tile)


# ---------------------------------------------------------------------------
# In-kernel building blocks
# ---------------------------------------------------------------------------
def _msg_scatter(obj_ref, x_ref, w1t_ref, wst_ref, wa_ref, wab_ref,
                 alpha_ref, agg_ref):
    """One edge tile: message = W1(hs+hr+h_sub), attention alpha, one-hot
    scatter-add of alpha*message into the VMEM-resident aggregate."""
    eb = pl.program_id(0)

    @pl.when(eb == 0)
    def _():
        agg_ref[...] = jnp.zeros_like(agg_ref)

    x = x_ref[...]                                                    # (te, D) bf16
    # bf16 MXU inputs, f32 accumulation (preferred_element_type)
    msg = jnp.dot(x, w1t_ref[...], preferred_element_type=jnp.float32)     # (te, D)
    att = jnp.maximum(
        jnp.dot(msg, wst_ref[...], preferred_element_type=jnp.float32), 0.0)  # (te, A)
    # w_alpha is a 1-output Linear: VPU multiply + lane reduce (no M=1 MXU pass)
    logit = jnp.sum(att * wa_ref[...], axis=1, keepdims=True) + wab_ref[...]
    alpha = jax.nn.sigmoid(logit)                                     # (te, 1)
    alpha_ref[...] = alpha
    # weighted messages in bf16 for the scatter matmul (accumulation stays f32)
    wmsg = (alpha * msg).astype(jnp.bfloat16)                         # (te, D)

    # scatter-sum over obj via a one-hot matmul; padded edges have zero x,
    # hence zero messages, hence contribute 0 regardless of their padded obj.
    # TODO(synk): for large graphs, bucket edges by obj on the host and use
    # scalar-prefetched per-block offsets so each block reduces only its edges.
    n_pad, te = agg_ref.shape[0], x.shape[0]
    rows = lax.broadcasted_iota(jnp.int32, (n_pad, te), 0)
    onehot = (rows == obj_ref[...]).astype(jnp.bfloat16)              # (n_pad, te)
    agg_ref[...] += jnp.dot(onehot, wmsg, preferred_element_type=jnp.float32)


def _gru_update(agg, h0, whact_ref, wih_ref, whh_ref, bih_ref, bhh_ref):
    """hidden_new = relu(W_h @ agg) followed by one nn.GRU step
    (seq_len = 1: output == h_n).  Gate matmuls are packed (D, 3D)."""
    d = h0.shape[1]
    xg = jnp.maximum(
        jnp.dot(agg, whact_ref[...], preferred_element_type=jnp.float32), 0.0)
    gi = jnp.dot(xg, wih_ref[...], preferred_element_type=jnp.float32) + bih_ref[...]
    gh = jnp.dot(h0, whh_ref[...], preferred_element_type=jnp.float32) + bhh_ref[...]
    r = jax.nn.sigmoid(gi[:, 0:d] + gh[:, 0:d])
    z = jax.nn.sigmoid(gi[:, d:2 * d] + gh[:, d:2 * d])
    nn_ = jnp.tanh(gi[:, 2 * d:3 * d] + r * gh[:, 2 * d:3 * d])
    return (1.0 - z) * nn_ + z * h0


# ---------------------------------------------------------------------------
# Fused kernels (edge pass + GRU epilogue [+ scoring epilogue on last layer])
# ---------------------------------------------------------------------------
def _edge_gru_kernel(obj_ref, x_ref, w1t_ref, wst_ref, wa_ref, wab_ref,
                     h0_ref, whact_ref, wih_ref, whh_ref, bih_ref, bhh_ref,
                     alpha_ref, hid_ref, agg_ref):
    _msg_scatter(obj_ref, x_ref, w1t_ref, wst_ref, wa_ref, wab_ref,
                 alpha_ref, agg_ref)

    @pl.when(pl.program_id(0) == pl.num_programs(0) - 1)
    def _():
        hid_ref[...] = _gru_update(agg_ref[...], h0_ref[...], whact_ref,
                                   wih_ref, whh_ref, bih_ref, bhh_ref)


def _edge_gru_score_kernel(obj_ref, x_ref, w1t_ref, wst_ref, wa_ref, wab_ref,
                           h0_ref, whact_ref, wih_ref, whh_ref, bih_ref,
                           bhh_ref, hsub_ref, wf_ref,
                           alpha_ref, score_ref, agg_ref):
    _msg_scatter(obj_ref, x_ref, w1t_ref, wst_ref, wa_ref, wab_ref,
                 alpha_ref, agg_ref)

    @pl.when(pl.program_id(0) == pl.num_programs(0) - 1)
    def _():
        h_new = _gru_update(agg_ref[...], h0_ref[...], whact_ref,
                            wih_ref, whh_ref, bih_ref, bhh_ref)
        # scores = W_final(hidden + h_sub); W_final is bias-free in the
        # reference.  VPU multiply + lane reduce (no N=1 MXU pass).
        score_ref[...] = jnp.sum((h_new + hsub_ref[...]) * wf_ref[...],
                                 axis=1, keepdims=True)


# ---------------------------------------------------------------------------
# Host-side wrappers
# ---------------------------------------------------------------------------
_SHARED_KEYS = ("w1t", "wst", "wa", "wab")
_GRU_KEYS = ("whact_t", "wih_t", "whh_t", "bih", "bhh")


def _common_specs(D, A, te, n_pad):
    c = lambda e: (0, 0)
    return [pl.BlockSpec((1, te), lambda e: (0, e)),        # obj (lane-major)
            pl.BlockSpec((te, D), lambda e: (e, 0)),        # x = hs + hr + h_sub
            pl.BlockSpec((D, D), c),                        # W1^T (bf16)
            pl.BlockSpec((D, A), c),                        # Ws_attn^T
            pl.BlockSpec((1, A), c),                        # w_alpha.weight
            pl.BlockSpec((1, 1), c),                        # w_alpha.bias
            pl.BlockSpec((n_pad, D), c),                    # h0 (index-copied)
            pl.BlockSpec((D, D), c),                        # W_h^T (act = relu)
            pl.BlockSpec((D, 3 * D), c),                    # GRU W_ih^T (packed r|z|n)
            pl.BlockSpec((D, 3 * D), c),                    # GRU W_hh^T
            pl.BlockSpec((1, 3 * D), c),                    # GRU b_ih
            pl.BlockSpec((1, 3 * D), c)]                    # GRU b_hh


def _pad_edges(x, obj, te):
    E = x.shape[0]
    te, E_pad = _edge_tiling(E, te)
    if E_pad != E:                     # zero rows contribute exactly 0
        x = jnp.pad(x, ((0, E_pad - E), (0, 0)))
        obj = jnp.pad(obj, (0, E_pad - E))
    return x, obj.astype(jnp.int32).reshape(1, E_pad), te, E_pad


def edge_gru_layer(x, obj, n_node, h0, lp, *, te=2048):
    """Fused GNNLayer + GRU step (non-final layer).
    x: (E, D) bf16; obj: (E,) int32; h0: (n_node, D) f32.
    Returns (alpha (E, 1) f32, hidden_new (n_node, D) f32)."""
    E, D = x.shape
    A = lp["wst"].shape[1]
    x, obj2, te, E_pad = _pad_edges(x, obj, te)
    n_pad = _round_up(max(n_node, 8), 8)
    h0p = jnp.pad(h0, ((0, n_pad - n_node), (0, 0)))

    alpha, hid = pl.pallas_call(
        _edge_gru_kernel,
        out_shape=(jax.ShapeDtypeStruct((E_pad, 1), jnp.float32),
                   jax.ShapeDtypeStruct((n_pad, D), jnp.float32)),
        grid_spec=pltpu.PrefetchScalarGridSpec(
            num_scalar_prefetch=0, grid=(E_pad // te,),
            in_specs=_common_specs(D, A, te, n_pad),
            out_specs=[pl.BlockSpec((te, 1), lambda e: (e, 0)),
                       pl.BlockSpec((n_pad, D), lambda e: (0, 0))],
            scratch_shapes=[pltpu.VMEM((n_pad, D), jnp.float32)]),
        compiler_params=pltpu.CompilerParams(
            dimension_semantics=("arbitrary",)),
    )(obj2, x, *[lp[k] for k in _SHARED_KEYS], h0p,
      *[lp[k] for k in _GRU_KEYS])
    return alpha[:E], hid[:n_node]


def edge_gru_score_layer(x, obj, n_node, h0, hsub, lp, wf, *, te=2048):
    """Fused GNNLayer + GRU + W_final scoring (final layer).
    Returns (alpha (E, 1) f32, scores (n_node,) f32)."""
    E, D = x.shape
    A = lp["wst"].shape[1]
    x, obj2, te, E_pad = _pad_edges(x, obj, te)
    n_pad = _round_up(max(n_node, 8), 8)
    h0p = jnp.pad(h0, ((0, n_pad - n_node), (0, 0)))
    hsubp = jnp.pad(hsub, ((0, n_pad - n_node), (0, 0)))

    specs = _common_specs(D, A, te, n_pad) + [
        pl.BlockSpec((n_pad, D), lambda e: (0, 0)),         # h_sub
        pl.BlockSpec((1, D), lambda e: (0, 0))]             # W_final.weight
    alpha, scores = pl.pallas_call(
        _edge_gru_score_kernel,
        out_shape=(jax.ShapeDtypeStruct((E_pad, 1), jnp.float32),
                   jax.ShapeDtypeStruct((n_pad, 1), jnp.float32)),
        grid_spec=pltpu.PrefetchScalarGridSpec(
            num_scalar_prefetch=0, grid=(E_pad // te,),
            in_specs=specs,
            out_specs=[pl.BlockSpec((te, 1), lambda e: (e, 0)),
                       pl.BlockSpec((n_pad, 1), lambda e: (0, 0))],
            scratch_shapes=[pltpu.VMEM((n_pad, D), jnp.float32)]),
        compiler_params=pltpu.CompilerParams(
            dimension_semantics=("arbitrary",)),
    )(obj2, x, *[lp[k] for k in _SHARED_KEYS], h0p,
      *[lp[k] for k in _GRU_KEYS], hsubp, wf)
    return alpha[:E], scores[:n_node, 0]


# ---------------------------------------------------------------------------
# Full RED_GNN_trans forward (row gathers / index_copy / final scatter are XLA
# glue; everything else runs inside the fused per-layer kernel).
# ---------------------------------------------------------------------------
def red_gnn_forward(subs, entity_emb, layer_params, layers_graph,
                    final_nodes, wf, n, n_ent, *, te=2048):
    D = entity_emb.shape[1]
    n_layer = len(layer_params)
    hidden = entity_emb[subs]                              # (n, D) pretrain emb
    h0 = jnp.zeros((subs.shape[0], D), jnp.float32)
    alpha_all = []
    scores = None
    # TODO(synk): loader.get_neighbors graph expansion (and its last_flag
    # hidden/h0 re-indexing) is data-dependent CPU preprocessing in the
    # reference model; per-layer (edges, n_node, old_nodes_new_idx) are inputs.
    for li, (lp, (edges, n_node, old_idx)) in enumerate(
            zip(layer_params, layers_graph)):
        sub, rel, obj = edges[:, 4], edges[:, 2], edges[:, 5]
        # per-edge input x = hs + hr + h_sub built with ROW gathers on
        # (rows, D) tables; bf16 halves the (E, D) HBM round trip.
        # TODO(synk): fuse these gathers into the kernel (scalar-prefetched
        # indices + in-kernel DMA/row gather) to remove the round trip entirely.
        x = (hidden[sub] + lp["rela"][rel]
             + entity_emb[edges[:, 1]] + entity_emb[edges[:, 3]]
             ).astype(jnp.bfloat16)
        # h0 = zeros(n_node, D).index_copy_(old_nodes_new_idx, h0)
        h0_new = jnp.zeros((n_node, D), jnp.float32).at[old_idx].set(h0)
        if li < n_layer - 1:
            alpha, hidden = edge_gru_layer(x, obj, n_node, h0_new, lp, te=te)
            h0 = hidden                        # single-step GRU: output == h_n
        else:
            hsub = entity_emb[subs[final_nodes[:, 0]]]
            alpha, scores = edge_gru_score_layer(
                x, obj, n_node, h0_new, hsub, lp, wf, te=te)
        alpha_all.append(alpha)

    scores_all = jnp.zeros((n, n_ent), jnp.float32).at[
        final_nodes[:, 0], final_nodes[:, 1]].set(scores)
    return scores_all, alpha_all


# ---------------------------------------------------------------------------
if __name__ == "__main__":
    key = jax.random.PRNGKey(0)
    n = 2            # number of query subjects (batch)
    D = 32           # hidden_dim
    A = 16           # attn_dim
    n_rel = 8
    n_ent = 256
    n_layer = 2

    ks = list(jax.random.split(key, 64))
    ki = iter(ks)

    def xavier(k, shape):
        fan_out, fan_in = shape              # PyTorch Linear weight is (out, in)
        bound = (6.0 / (fan_in + fan_out)) ** 0.5
        return jax.random.uniform(k, shape, jnp.float32, -bound, bound)

    def uinit(k, shape, bound):
        return jax.random.uniform(k, shape, jnp.float32, -bound, bound)

    entity_pretrain_emb = xavier(next(ki), (n_ent, D))

    gru_b = 1.0 / (D ** 0.5)
    layer_params = []
    for _ in range(n_layer):
        # PyTorch-layout weights, then transposed / packed for row-major use.
        W1 = xavier(next(ki), (D, D))             # W1.weight
        Ws = xavier(next(ki), (A, D))             # Ws_attn.weight
        wa = xavier(next(ki), (1, A))             # w_alpha.weight
        Wh = xavier(next(ki), (D, D))             # W_h.weight
        w_ih = uinit(next(ki), (3 * D, D), gru_b)  # GRU weight_ih_l0 (rows [r;z;n])
        w_hh = uinit(next(ki), (3 * D, D), gru_b)  # GRU weight_hh_l0
        b_ih = uinit(next(ki), (3 * D,), gru_b)
        b_hh = uinit(next(ki), (3 * D,), gru_b)
        layer_params.append(dict(
            rela=xavier(next(ki), (n_rel, D)),        # nn.Embedding(n_rel, D)
            w1t=W1.T.astype(jnp.bfloat16),            # W1^T, bf16 MXU operand
            wst=Ws.T,                                 # Ws_attn^T
            wa=wa,                                    # w_alpha.weight (1, A)
            wab=jnp.zeros((1, 1), jnp.float32),       # w_alpha.bias (zero init)
            whact_t=Wh.T,                             # W_h^T  (act = relu)
            wih_t=w_ih.T,                             # (D, 3D) packed [r|z|n]
            whh_t=w_hh.T,                             # (D, 3D) packed [r|z|n]
            bih=b_ih.reshape(1, 3 * D),
            bhh=b_hh.reshape(1, 3 * D),
        ))
    Wf = xavier(next(ki), (1, D))                     # W_final.weight (bias-free)

    subs = jnp.array([3, 17], dtype=jnp.int32)

    # synthetic per-layer graph expansion (stand-in for loader.get_neighbors)
    node_counts = [32, 256]
    edge_counts = [96, 640]
    prev_counts = [n, node_counts[0]]
    layers_graph = []
    for i in range(n_layer):
        ek = jax.random.split(next(ki), 5)
        E = edge_counts[i]
        edges = jnp.stack([
            jnp.zeros((E,), jnp.int32),                            # unused col
            jax.random.randint(ek[0], (E,), 0, n_ent),             # head ent
            jax.random.randint(ek[1], (E,), 0, n_rel),             # relation
            jax.random.randint(ek[2], (E,), 0, n_ent),             # tail ent
            jax.random.randint(ek[3], (E,), 0, prev_counts[i]),    # sub node
            jax.random.randint(ek[4], (E,), 0, node_counts[i]),    # obj node
        ], axis=1).astype(jnp.int32)
        old_idx = jnp.arange(prev_counts[i], dtype=jnp.int32)
        layers_graph.append((edges, node_counts[i], old_idx))

    # final node table (batch_idx, entity_id): unique pairs
    half = node_counts[-1] // n
    perm_keys = jax.random.split(next(ki), n)
    final_nodes = jnp.stack([
        jnp.repeat(jnp.arange(n, dtype=jnp.int32), half),
        jnp.concatenate([jax.random.permutation(k, n_ent)[:half]
                         for k in perm_keys]).astype(jnp.int32),
    ], axis=1)

    scores_all, alpha_all = red_gnn_forward(
        subs, entity_pretrain_emb, layer_params, layers_graph,
        final_nodes, Wf, n, n_ent)
    jax.block_until_ready(scores_all)
    for a in alpha_all:
        jax.block_until_ready(a)
    assert scores_all.shape == (n, n_ent)
    assert alpha_all[0].shape == (edge_counts[0], 1)
    assert alpha_all[1].shape == (edge_counts[1], 1)
    print("KERNEL_OK")
</pallas_src>

<mosaic_0001>
module attributes {stable_mosaic.version = 11 : i64} {
  func.func @_edge_gru_kernel(%arg0: i32, %arg1: memref<1x128xi32, #tpu.memory_space<vmem>>, %arg2: memref<128x32xbf16, #tpu.memory_space<vmem>>, %arg3: memref<32x32xbf16, #tpu.memory_space<vmem>>, %arg4: memref<32x16xf32, #tpu.memory_space<vmem>>, %arg5: memref<1x16xf32, #tpu.memory_space<vmem>>, %arg6: memref<1x1xf32, #tpu.memory_space<vmem>>, %arg7: memref<32x32xf32, #tpu.memory_space<vmem>>, %arg8: memref<32x32xf32, #tpu.memory_space<vmem>>, %arg9: memref<32x96xf32, #tpu.memory_space<vmem>>, %arg10: memref<32x96xf32, #tpu.memory_space<vmem>>, %arg11: memref<1x96xf32, #tpu.memory_space<vmem>>, %arg12: memref<1x96xf32, #tpu.memory_space<vmem>>, %arg13: memref<128x1xf32, #tpu.memory_space<vmem>>, %arg14: memref<32x32xf32, #tpu.memory_space<vmem>>, %arg15: memref<32x32xf32, #tpu.memory_space<vmem>>) attributes {dimension_semantics = [#tpu.dimension_semantics<arbitrary>], iteration_bounds = array<i64: 1>, scalar_prefetch = 0 : i64, scratch_operands = 1 : i64, tpu.core_type = #tpu.core_type<tc>, window_params = [{transform_indices = @transform_0, window_bounds = array<i64: 1, 128>}, {transform_indices = @transform_1, window_bounds = array<i64: 128, 32>}, {pipeline_mode = #tpu.pipeline_mode<synchronous>, transform_indices = @transform_2, window_bounds = array<i64: 32, 32>}, {pipeline_mode = #tpu.pipeline_mode<synchronous>, transform_indices = @transform_3, window_bounds = array<i64: 32, 16>}, {pipeline_mode = #tpu.pipeline_mode<synchronous>, transform_indices = @transform_4, window_bounds = array<i64: 1, 16>}, {pipeline_mode = #tpu.pipeline_mode<synchronous>, transform_indices = @transform_5, window_bounds = array<i64: 1, 1>}, {pipeline_mode = #tpu.pipeline_mode<synchronous>, transform_indices = @transform_6, window_bounds = array<i64: 32, 32>}, {pipeline_mode = #tpu.pipeline_mode<synchronous>, transform_indices = @transform_7, window_bounds = array<i64: 32, 32>}, {pipeline_mode = #tpu.pipeline_mode<synchronous>, transform_indices = @transform_8, window_bounds = array<i64: 32, 96>}, {pipeline_mode = #tpu.pipeline_mode<synchronous>, transform_indices = @transform_9, window_bounds = array<i64: 32, 96>}, {pipeline_mode = #tpu.pipeline_mode<synchronous>, transform_indices = @transform_10, window_bounds = array<i64: 1, 96>}, {pipeline_mode = #tpu.pipeline_mode<synchronous>, transform_indices = @transform_11, window_bounds = array<i64: 1, 96>}, {transform_indices = @transform_12, window_bounds = array<i64: 128, 1>}, {pipeline_mode = #tpu.pipeline_mode<synchronous>, transform_indices = @transform_13, window_bounds = array<i64: 32, 32>}]} {
    %c0_i32 = arith.constant 0 : i32
    %0 = arith.cmpi eq, %arg0, %c0_i32 : i32
    %1 = arith.extui %0 : i1 to i32
    %c0_i32_0 = arith.constant 0 : i32
    %2 = arith.cmpi ne, %1, %c0_i32_0 : i32
    scf.if %2 {
      %cst_25 = arith.constant 0.000000e+00 : f32
      %41 = vector.broadcast %cst_25 : f32 to vector<32x32xf32>
      %c0_26 = arith.constant 0 : index
      %c0_27 = arith.constant 0 : index
      %42 = vector.load %arg15[%c0_26, %c0_27] : memref<32x32xf32, #tpu.memory_space<vmem>>, vector<32x32xf32>
      tpu.vector_store %arg15[%c0_26, %c0_27], %41 {strides = array<i32>} : memref<32x32xf32, #tpu.memory_space<vmem>>, vector<32x32xf32>,
    } else {
    }
    %c0 = arith.constant 0 : index
    %c0_1 = arith.constant 0 : index
    %3 = vector.load %arg2[%c0, %c0_1] : memref<128x32xbf16, #tpu.memory_space<vmem>>, vector<128x32xbf16>
    %c0_2 = arith.constant 0 : index
    %c0_3 = arith.constant 0 : index
    %4 = vector.load %arg3[%c0_2, %c0_3] : memref<32x32xbf16, #tpu.memory_space<vmem>>, vector<32x32xbf16>
    %cst = arith.constant dense<0.000000e+00> : vector<128x32xf32>
    %5 = tpu.matmul %3, %4, %cst {dimension_numbers = #tpu.dot_dimension_numbers<[1], [0], [0], [1], [0, 0, 1, 1], [], []>} : vector<128x32xbf16>, vector<32x32xbf16>, vector<128x32xf32> -> vector<128x32xf32>
    %c0_4 = arith.constant 0 : index
    %c0_5 = arith.constant 0 : index
    %6 = vector.load %arg4[%c0_4, %c0_5] : memref<32x16xf32, #tpu.memory_space<vmem>>, vector<32x16xf32>
    %cst_6 = arith.constant dense<0.000000e+00> : vector<128x16xf32>
    %7 = tpu.matmul %5, %6, %cst_6 {dimension_numbers = #tpu.dot_dimension_numbers<[1], [0], [0], [1], [0, 0, 1, 1], [], []>} : vector<128x32xf32>, vector<32x16xf32>, vector<128x16xf32> -> vector<128x16xf32>
    %cst_7 = arith.constant 0.000000e+00 : f32
    %8 = vector.broadcast %cst_7 : f32 to vector<128x16xf32>
    %9 = arith.maximumf %7, %8 : vector<128x16xf32>
    %c0_8 = arith.constant 0 : index
    %c0_9 = arith.constant 0 : index
    %10 = vector.load %arg5[%c0_8, %c0_9] : memref<1x16xf32, #tpu.memory_space<vmem>>, vector<1x16xf32>
    %11 = vector.broadcast %10 : vector<1x16xf32> to vector<128x16xf32>
    %12 = arith.mulf %9, %11 : vector<128x16xf32>
    %cst_10 = arith.constant dense<0.000000e+00> : vector<128xf32>
    %13 = vector.multi_reduction <add>, %12, %cst_10 [1] : vector<128x16xf32> to vector<128xf32>
    %14 = vector.shape_cast %13 : vector<128xf32> to vector<128x1xf32>
    %c0_11 = arith.constant 0 : index
    %c0_12 = arith.constant 0 : index
    %15 = vector.load %arg6[%c0_11, %c0_12] : memref<1x1xf32, #tpu.memory_space<vmem>>, vector<1x1xf32>
    %16 = vector.broadcast %15 : vector<1x1xf32> to vector<128x1xf32>
    %17 = arith.addf %14, %16 : vector<128x1xf32>
    %18 = arith.negf %17 : vector<128x1xf32>
    %19 = math.exp %18 : vector<128x1xf32>
    %cst_13 = arith.constant 1.000000e+00 : f32
    %20 = vector.broadcast %cst_13 : f32 to vector<128x1xf32>
    %21 = arith.addf %20, %19 : vector<128x1xf32>
    %22 = arith.divf %20, %21 : vector<128x1xf32>
    %c0_14 = arith.constant 0 : index
    %c0_15 = arith.constant 0 : index
    %23 = vector.load %arg13[%c0_14, %c0_15] : memref<128x1xf32, #tpu.memory_space<vmem>>, vector<128x1xf32>
    tpu.vector_store %arg13[%c0_14, %c0_15], %22 {strides = array<i32>} : memref<128x1xf32, #tpu.memory_space<vmem>>, vector<128x1xf32>,
    %24 = vector.broadcast %22 : vector<128x1xf32> to vector<128x32xf32>
    %25 = arith.mulf %24, %5 : vector<128x32xf32>
    %26 = arith.truncf %25 : vector<128x32xf32> to vector<128x32xbf16>
    %27 = tpu.iota {dimensions = array<i32: 0>} : vector<32x128xi32>
    %c0_16 = arith.constant 0 : index
    %c0_17 = arith.constant 0 : index
    %28 = vector.load %arg1[%c0_16, %c0_17] : memref<1x128xi32, #tpu.memory_space<vmem>>, vector<1x128xi32>
    %29 = vector.broadcast %28 : vector<1x128xi32> to vector<32x128xi32>
    %30 = arith.cmpi eq, %27, %29 : vector<32x128xi32>
    %31 = arith.extui %30 : vector<32x128xi1> to vector<32x128xi32>
    %32 = arith.sitofp %31 : vector<32x128xi32> to vector<32x128xf32>
    %33 = arith.truncf %32 : vector<32x128xf32> to vector<32x128xbf16>
    %c0_18 = arith.constant 0 : index
    %c0_19 = arith.constant 0 : index
    %34 = vector.load %arg15[%c0_18, %c0_19] : memref<32x32xf32, #tpu.memory_space<vmem>>, vector<32x32xf32>
    %cst_20 = arith.constant dense<0.000000e+00> : vector<32x32xf32>
    %35 = tpu.matmul %33, %26, %cst_20 {dimension_numbers = #tpu.dot_dimension_numbers<[1], [0], [0], [1], [0, 0, 1, 1], [], []>} : vector<32x128xbf16>, vector<128x32xbf16>, vector<32x32xf32> -> vector<32x32xf32>
    %36 = arith.addf %34, %35 : vector<32x32xf32>
    %c0_21 = arith.constant 0 : index
    %c0_22 = arith.constant 0 : index
    %37 = vector.load %arg15[%c0_21, %c0_22] : memref<32x32xf32, #tpu.memory_space<vmem>>, vector<32x32xf32>
    tpu.vector_store %arg15[%c0_21, %c0_22], %36 {strides = array<i32>} : memref<32x32xf32, #tpu.memory_space<vmem>>, vector<32x32xf32>,
    %c0_i32_23 = arith.constant 0 : i32
    %38 = arith.cmpi eq, %arg0, %c0_i32_23 : i32
    %39 = arith.extui %38 : i1 to i32
    %c0_i32_24 = arith.constant 0 : i32
    %40 = arith.cmpi ne, %39, %c0_i32_24 : i32
    scf.if %40 {
      %c0_25 = arith.constant 0 : index
      %c0_26 = arith.constant 0 : index
      %41 = vector.load %arg15[%c0_25, %c0_26] : memref<32x32xf32, #tpu.memory_space<vmem>>, vector<32x32xf32>
      %c0_27 = arith.constant 0 : index
      %c0_28 = arith.constant 0 : index
      %42 = vector.load %arg7[%c0_27, %c0_28] : memref<32x32xf32, #tpu.memory_space<vmem>>, vector<32x32xf32>
      %c0_29 = arith.constant 0 : index
      %c0_30 = arith.constant 0 : index
      %43 = vector.load %arg8[%c0_29, %c0_30] : memref<32x32xf32, #tpu.memory_space<vmem>>, vector<32x32xf32>
      %cst_31 = arith.constant dense<0.000000e+00> : vector<32x32xf32>
      %44 = tpu.matmul %41, %43, %cst_31 {dimension_numbers = #tpu.dot_dimension_numbers<[1], [0], [0], [1], [0, 0, 1, 1], [], []>} : vector<32x32xf32>, vector<32x32xf32>, vector<32x32xf32> -> vector<32x32xf32>
      %cst_32 = arith.constant 0.000000e+00 : f32
      %45 = vector.broadcast %cst_32 : f32 to vector<32x32xf32>
      %46 = arith.maximumf %44, %45 : vector<32x32xf32>
      %c0_33 = arith.constant 0 : index
      %c0_34 = arith.constant 0 : index
      %47 = vector.load %arg9[%c0_33, %c0_34] : memref<32x96xf32, #tpu.memory_space<vmem>>, vector<32x96xf32>
      %cst_35 = arith.constant dense<0.000000e+00> : vector<32x96xf32>
      %48 = tpu.matmul %46, %47, %cst_35 {dimension_numbers = #tpu.dot_dimension_numbers<[1], [0], [0], [1], [0, 0, 1, 1], [], []>} : vector<32x32xf32>, vector<32x96xf32>, vector<32x96xf32> -> vector<32x96xf32>
      %c0_36 = arith.constant 0 : index
      %c0_37 = arith.constant 0 : index
      %49 = vector.load %arg11[%c0_36, %c0_37] : memref<1x96xf32, #tpu.memory_space<vmem>>, vector<1x96xf32>
      %50 = vector.broadcast %49 : vector<1x96xf32> to vector<32x96xf32>
      %51 = arith.addf %48, %50 : vector<32x96xf32>
      %c0_38 = arith.constant 0 : index
      %c0_39 = arith.constant 0 : index
      %52 = vector.load %arg10[%c0_38, %c0_39] : memref<32x96xf32, #tpu.memory_space<vmem>>, vector<32x96xf32>
      %cst_40 = arith.constant dense<0.000000e+00> : vector<32x96xf32>
      %53 = tpu.matmul %42, %52, %cst_40 {dimension_numbers = #tpu.dot_dimension_numbers<[1], [0], [0], [1], [0, 0, 1, 1], [], []>} : vector<32x32xf32>, vector<32x96xf32>, vector<32x96xf32> -> vector<32x96xf32>
      %c0_41 = arith.constant 0 : index
      %c0_42 = arith.constant 0 : index
      %54 = vector.load %arg12[%c0_41, %c0_42] : memref<1x96xf32, #tpu.memory_space<vmem>>, vector<1x96xf32>
      %55 = vector.broadcast %54 : vector<1x96xf32> to vector<32x96xf32>
      %56 = arith.addf %53, %55 : vector<32x96xf32>
      %57 = vector.extract_strided_slice %51 {offsets = [0, 0], sizes = [32, 32], strides = [1, 1]} : vector<32x96xf32> to vector<32x32xf32>
      %58 = vector.extract_strided_slice %56 {offsets = [0, 0], sizes = [32, 32], strides = [1, 1]} : vector<32x96xf32> to vector<32x32xf32>
      %59 = arith.addf %57, %58 : vector<32x32xf32>
      %60 = arith.negf %59 : vector<32x32xf32>
      %61 = math.exp %60 : vector<32x32xf32>
      %cst_43 = arith.constant 1.000000e+00 : f32
      %62 = vector.broadcast %cst_43 : f32 to vector<32x32xf32>
      %63 = arith.addf %62, %61 : vector<32x32xf32>
      %64 = arith.divf %62, %63 : vector<32x32xf32>
      %65 = vector.extract_strided_slice %51 {offsets = [0, 32], sizes = [32, 32], strides = [1, 1]} : vector<32x96xf32> to vector<32x32xf32>
      %66 = vector.extract_strided_slice %56 {offsets = [0, 32], sizes = [32, 32], strides = [1, 1]} : vector<32x96xf32> to vector<32x32xf32>
      %67 = arith.addf %65, %66 : vector<32x32xf32>
      %68 = arith.negf %67 : vector<32x32xf32>
      %69 = math.exp %68 : vector<32x32xf32>
      %cst_44 = arith.constant 1.000000e+00 : f32
      %70 = vector.broadcast %cst_44 : f32 to vector<32x32xf32>
      %71 = arith.addf %70, %69 : vector<32x32xf32>
      %72 = arith.divf %70, %71 : vector<32x32xf32>
      %73 = vector.extract_strided_slice %51 {offsets = [0, 64], sizes = [32, 32], strides = [1, 1]} : vector<32x96xf32> to vector<32x32xf32>
      %74 = vector.extract_strided_slice %56 {offsets = [0, 64], sizes = [32, 32], strides = [1, 1]} : vector<32x96xf32> to vector<32x32xf32>
      %75 = arith.mulf %64, %74 : vector<32x32xf32>
      %76 = arith.addf %73, %75 : vector<32x32xf32>
      %77 = math.tanh %76 : vector<32x32xf32>
      %cst_45 = arith.constant 1.000000e+00 : f32
      %78 = vector.broadcast %cst_45 : f32 to vector<32x32xf32>
      %79 = arith.subf %78, %72 : vector<32x32xf32>
      %80 = arith.mulf %79, %77 : vector<32x32xf32>
      %81 = arith.mulf %72, %42 : vector<32x32xf32>
      %82 = arith.addf %80, %81 : vector<32x32xf32>
      %c0_46 = arith.constant 0 : index
      %c0_47 = arith.constant 0 : index
      %83 = vector.load %arg14[%c0_46, %c0_47] : memref<32x32xf32, #tpu.memory_space<vmem>>, vector<32x32xf32>
      tpu.vector_store %arg14[%c0_46, %c0_47], %82 {strides = array<i32>} : memref<32x32xf32, #tpu.memory_space<vmem>>, vector<32x32xf32>,
    } else {
    }
    return
  }
  func.func @transform_0(%arg0: i32) -> (i32, i32) {
    %c0_i32 = arith.constant 0 : i32
    %c0_i32_0 = arith.constant 0 : i32
    return %c0_i32, %arg0 : i32, i32
  }
  func.func @transform_1(%arg0: i32) -> (i32, i32) {
    %c0_i32 = arith.constant 0 : i32
    %c0_i32_0 = arith.constant 0 : i32
    return %arg0, %c0_i32 : i32, i32
  }
  func.func @transform_2(%arg0: i32) -> (i32, i32) {
    %c0_i32 = arith.constant 0 : i32
    %c0_i32_0 = arith.constant 0 : i32
    %c0_i32_1 = arith.constant 0 : i32
    return %c0_i32, %c0_i32_0 : i32, i32
  }
  func.func @transform_3(%arg0: i32) -> (i32, i32) {
    %c0_i32 = arith.constant 0 : i32
    %c0_i32_0 = arith.constant 0 : i32
    %c0_i32_1 = arith.constant 0 : i32
    return %c0_i32, %c0_i32_0 : i32, i32
  }
  func.func @transform_4(%arg0: i32) -> (i32, i32) {
    %c0_i32 = arith.constant 0 : i32
    %c0_i32_0 = arith.constant 0 : i32
    %c0_i32_1 = arith.constant 0 : i32
    return %c0_i32, %c0_i32_0 : i32, i32
  }
  func.func @transform_5(%arg0: i32) -> (i32, i32) {
    %c0_i32 = arith.constant 0 : i32
    %c0_i32_0 = arith.constant 0 : i32
    %c0_i32_1 = arith.constant 0 : i32
    return %c0_i32, %c0_i32_0 : i32, i32
  }
  func.func @transform_6(%arg0: i32) -> (i32, i32) {
    %c0_i32 = arith.constant 0 : i32
    %c0_i32_0 = arith.constant 0 : i32
    %c0_i32_1 = arith.constant 0 : i32
    return %c0_i32, %c0_i32_0 : i32, i32
  }
  func.func @transform_7(%arg0: i32) -> (i32, i32) {
    %c0_i32 = arith.constant 0 : i32
    %c0_i32_0 = arith.constant 0 : i32
    %c0_i32_1 = arith.constant 0 : i32
    return %c0_i32, %c0_i32_0 : i32, i32
  }
  func.func @transform_8(%arg0: i32) -> (i32, i32) {
    %c0_i32 = arith.constant 0 : i32
    %c0_i32_0 = arith.constant 0 : i32
    %c0_i32_1 = arith.constant 0 : i32
    return %c0_i32, %c0_i32_0 : i32, i32
  }
  func.func @transform_9(%arg0: i32) -> (i32, i32) {
    %c0_i32 = arith.constant 0 : i32
    %c0_i32_0 = arith.constant 0 : i32
    %c0_i32_1 = arith.constant 0 : i32
    return %c0_i32, %c0_i32_0 : i32, i32
  }
  func.func @transform_10(%arg0: i32) -> (i32, i32) {
    %c0_i32 = arith.constant 0 : i32
    %c0_i32_0 = arith.constant 0 : i32
    %c0_i32_1 = arith.constant 0 : i32
    return %c0_i32, %c0_i32_0 : i32, i32
  }
  func.func @transform_11(%arg0: i32) -> (i32, i32) {
    %c0_i32 = arith.constant 0 : i32
    %c0_i32_0 = arith.constant 0 : i32
    %c0_i32_1 = arith.constant 0 : i32
    return %c0_i32, %c0_i32_0 : i32, i32
  }
  func.func @transform_12(%arg0: i32) -> (i32, i32) {
    %c0_i32 = arith.constant 0 : i32
    %c0_i32_0 = arith.constant 0 : i32
    return %arg0, %c0_i32 : i32, i32
  }
  func.func @transform_13(%arg0: i32) -> (i32, i32) {
    %c0_i32 = arith.constant 0 : i32
    %c0_i32_0 = arith.constant 0 : i32
    %c0_i32_1 = arith.constant 0 : i32
    return %c0_i32, %c0_i32_0 : i32, i32
  }
}

</mosaic_0001>

<bundles_post_ra>
// kernel: tpu_custom_call.1
= control target key start
LH: loop header
LB: loop body
LE: loop exit
PB: predicated region body
PF: predicated region fallthrough
CT: control target
= control target key end

     0   :  { %s2212_s0 = inlined_call_operand.vmem [shape: s32[1,128], index: 0, kind: input, shape index: {}]   ;;  %s2213_s1 = inlined_call_operand.vmem [shape: bf16[128,32], index: 1, kind: input, shape index: {}]   ;;  %s2214_s2 = inlined_call_operand.vmem [shape: bf16[32,32], index: 2, kind: input, shape index: {}]   ;;  %s2215_s3 = inlined_call_operand.vmem [shape: f32[32,16], index: 3, kind: input, shape index: {}]   ;;  %s2216_s4 = inlined_call_operand.vmem [shape: f32[1,16], index: 4, kind: input, shape index: {}]   ;;  %s2217_s5 = inlined_call_operand.<no memory space> [shape: f32[1,1], index: 5, kind: input, shape index: {}]   ;;  %s2218_s6 = inlined_call_operand.vmem [shape: f32[32,32], index: 6, kind: input, shape index: {}]   ;;  %s2219_s7 = inlined_call_operand.vmem [shape: f32[32,32], index: 7, kind: input, shape index: {}]   ;;  %s2220_s8 = inlined_call_operand.vmem [shape: f32[32,96], index: 8, kind: input, shape index: {}]   ;;  %s2221_s9 = inlined_call_operand.hbm [shape: f32[32,96], index: 9, kind: input, shape index: {}]   ;;  %s2222_s10 = inlined_call_operand.vmem [shape: f32[1,96], index: 10, kind: input, shape index: {}]   ;;  %s2223_s11 = inlined_call_operand.vmem [shape: f32[1,96], index: 11, kind: input, shape index: {}]   ;;  %s2224_s12 = inlined_call_operand.vmem [shape: f32[128,1], index: 12, kind: output, shape index: {0}]   ;;  %s2225_s13 = inlined_call_operand.hbm [shape: f32[32,32], index: 13, kind: output, shape index: {1}]  }
   0x1   :  { %v19_v0 = vstv %s2217_s5 }
   0x2   :  { %20 = vst [vmem:[#allocation3] sm:$0x1] %v19_v0 }
   0x3   :  { %21 = vsyncpa [#allocation5], 0 }
   0x4   :  { %22 = vsyncpa [#allocation6], 0  ;;  %s45_s29 = sshll.u32 %s2221_s9, 4  ;;  %s1564_s30 = smov [#allocation4]   ;;  %s46_s29 = int_to_ptr.hbm [resolvable:$true] %s45_s29 }
   0x5   :  { %s47_s14 = sshll.u32 %s1564_s30, 4  ;;  %s1565_s15 = smov 128   ;;  %s48_s14 = int_to_ptr.vmem [resolvable:$true] %s47_s14 }
   0x6   :  { %s1566_s16 = smov 8  }
   0x7   :  { %53 = dma.hbm_to_vmem [thread:$0]  %s46_s29, 512, %s48_s14, [#allocation5], %s1565_s15, %s1565_s15, %s1566_s16  }
   0x8   :  { %1560 = dma.done.wait [#allocation5], 512  }
   0x9   :  { %1561 = vsyncadd [#allocation5], 4294966784  ;;  %v1399_v1 = vld [vmem:[%s2214_s2 + $0x8] sm:$0xff]  ;;  %v1398_v2 = vld [vmem:[%s2214_s2] sm:$0xff]  ;;  %vm67_vm0 = vcmask 261120   ;;  %vm371_vm1 = vcmask 130048  }
   0xa   :  { %175 = vmatpush.bf16.msra.mxu0 %v1399_v1  ;;  %1400 = vmatpush.bf16.msra.mxu3 %v1399_v1  ;;  %v1390_v3 = vld [vmem:[%s2213_s1] sm:$0xff]  ;;  %v1391_v4 = vld [vmem:[%s2213_s1 + $0x8] sm:$0xff]  ;;  %v1392_v5 = vld [vmem:[%s2213_s1 + $0x10] sm:$0xff]  ;;  %vm744_vm5 = vcmask 7168   ;;  %s1570_s9 = smov 64   ;;  %s1572_s20 = smov 96  }
   0xb   :  { %v1393_v6 = vld [vmem:[%s2213_s1 + $0x18] sm:$0xff]  ;;  %v1394_v7 = vld [vmem:[%s2213_s1 + $0x20] sm:$0xff]  ;;  %v220_v10 = vld [vmem:[%s2215_s3 + $0x10] sm:$0xff]  ;;  %s1573_s21 = smov [#allocation7]   ;;  %s1271_s24 = sshll.u32 %s2225_s13, 4  ;;  %s1272_s24 = int_to_ptr.hbm [resolvable:$true] %s1271_s24 }
   0xc   :  { %v1397_v8 = vld [vmem:[%s2213_s1 + $0x38] sm:$0xff]  ;;  %v219_v11 = vld [vmem:[%s2215_s3 + $0x8] sm:$0xff]  ;;  %v1396_v13 = vld [vmem:[%s2213_s1 + $0x30] sm:$0xff]  ;;  %s1269_s22 = sshll.u32 %s1573_s21, 4  ;;  %s1270_s22 = int_to_ptr.vmem [resolvable:$true] %s1269_s22 }
   0xd   :  { %v221_v9 = vld [vmem:[%s2215_s3 + $0x18] sm:$0xff]  ;;  %v1395_v12 = vld [vmem:[%s2213_s1 + $0x28] sm:$0xff]  ;;  %v218_v14 = vld [vmem:[%s2215_s3] sm:$0xff] }
   0xe   :  { %176 = vmatpush.bf16.msra.mxu0 %v1398_v2  ;;  %1401 = vmatpush.bf16.msra.mxu3 %v1398_v2  ;;  %v1776_v43 = vld [vmem:[%s2216_s4] ss:$0 sm:$0xff] }
   0xf   :  { %282 = vmatpush.msra.mxu1 %v221_v9 }
  0x11   :  { %1326 = vmatmul.msk.bf16.vlgmr.msra.gmra.mxu0 %vm67_vm0, %v1390_v3  ;;  %1333 = vmatmul.msk.bf16.vlgmr.msra.gmra.mxu3 %vm67_vm0, %v1397_v8 }
  0x12   :  { %1402 = vmatpush.msrb.mxu3 %v221_v9  ;;  %283 = vmatpush.msra.mxu1 %v220_v10 }
  0x14   :  { %1403 = vmatpush.msrb.mxu3 %v220_v10  ;;  %284 = vmatpush.msra.mxu1 %v219_v11 }
  0x16   :  { %1404 = vmatpush.msrb.mxu3 %v219_v11  ;;  %285 = vmatpush.msra.mxu1 %v218_v14 }
  0x18   :  { %1405 = vmatpush.msrb.mxu3 %v218_v14 }
  0x21   :  { %1327 = vmatmul.msk.bf16.gmra.mxu0 %vm67_vm0, %v1391_v4 }
  0x31   :  { %1328 = vmatmul.msk.bf16.gmra.mxu0 %vm67_vm0, %v1392_v5 }
  0x41   :  { %1329 = vmatmul.msk.bf16.gmra.mxu0 %vm67_vm0, %v1393_v6 }
  0x51   :  { %1330 = vmatmul.msk.bf16.gmra.mxu0 %vm67_vm0, %v1394_v7 }
  0x61   :  { %1331 = vmatmul.msk.bf16.gmra.mxu0 %vm67_vm0, %v1395_v12 }
  0x71   :  { %1332 = vmatmul.msk.bf16.gmra.mxu0 %vm67_vm0, %v1396_v13 }
  0x8e   :  { %v1703_v15 = vpop.f32.mrf.mxu0 }
  0x8f   :  { %1334 = vmatmul.msk.f32.vlgmr.msra.gmra.mxu1 %vm67_vm0, %v1703_v15 }
  0x94   :  { %v1759_v29 = vpop.f32.mrf.mxu3 }
  0x96   :  { %v1707_v16 = vpop.f32.mrf.mxu0 }
  0x97   :  { %1335 = vmatmul.msk.f32.gmra.mxu1 %vm67_vm0, %v1707_v16 }
  0x9c   :  { %v1763_v30 = vpop.f32.mrf.mxu3 }
  0x9e   :  { %v1711_v17 = vpop.f32.mrf.mxu0 }
  0x9f   :  { %1336 = vmatmul.msk.f32.gmra.mxu1 %vm67_vm0, %v1711_v17 }
  0xa6   :  { %v1715_v18 = vpop.f32.mrf.mxu0 }
  0xa7   :  { %1337 = vmatmul.msk.f32.gmra.mxu1 %vm67_vm0, %v1715_v18 }
  0xae   :  { %v1719_v19 = vpop.f32.mrf.mxu0 }
  0xaf   :  { %1338 = vmatmul.msk.f32.gmra.mxu1 %vm67_vm0, %v1719_v19 }
  0xb6   :  { %v1723_v20 = vpop.f32.mrf.mxu0 }
  0xb7   :  { %1339 = vmatmul.msk.f32.gmra.mxu1 %vm67_vm0, %v1723_v20 }
  0xbe   :  { %v1727_v21 = vpop.f32.mrf.mxu0 }
  0xbf   :  { %1340 = vmatmul.msk.f32.gmra.mxu1 %vm67_vm0, %v1727_v21 }
  0xc6   :  { %v1731_v22 = vpop.f32.mrf.mxu0 }
  0xc7   :  { %1341 = vmatmul.msk.f32.gmra.mxu1 %vm67_vm0, %v1731_v22 }
  0xce   :  { %v1735_v23 = vpop.f32.mrf.mxu0 }
  0xcf   :  { %1342 = vmatmul.msk.f32.gmra.mxu1 %vm67_vm0, %v1735_v23 }
  0xd6   :  { %v1739_v24 = vpop.f32.mrf.mxu0 }
  0xd7   :  { %1343 = vmatmul.msk.f32.gmra.mxu1 %vm67_vm0, %v1739_v24 }
  0xde   :  { %v1743_v25 = vpop.f32.mrf.mxu0 }
  0xdf   :  { %1344 = vmatmul.msk.f32.gmra.mxu1 %vm67_vm0, %v1743_v25 }
  0xe6   :  { %v1747_v26 = vpop.f32.mrf.mxu0 }
  0xe7   :  { %1345 = vmatmul.msk.f32.gmra.mxu1 %vm67_vm0, %v1747_v26 }
  0xee   :  { %v1751_v27 = vpop.f32.mrf.mxu0 }
  0xef   :  { %1346 = vmatmul.msk.f32.gmra.mxu1 %vm67_vm0, %v1751_v27 }
  0xf6   :  { %v1755_v28 = vpop.f32.mrf.mxu0 }
  0xf7   :  { %1347 = vmatmul.msk.f32.vlgmr.msrb.gmra.mxu3 %vm67_vm0, %v1755_v28 }
  0xff   :  { %1348 = vmatmul.msk.f32.gmra.mxu3 %vm67_vm0, %v1759_v29 }
 0x107   :  { %1349 = vmatmul.msk.f32.gmra.mxu3 %vm67_vm0, %v1763_v30 }
 0x10c   :  { %v287_v31 = vpop.f32.mrf.mxu1 }
 0x10d   :  { %v335_v59 = vmax.f32 %v287_v31, 0.0 }
 0x10f   :  { %v355_v0 = vmul.f32 %v1776_v43, %v335_v59 }
 0x111   :  { %v372_v3 = vsel %vm371_vm1, %v355_v0, 0.0 }
 0x114   :  { %v1767_v32 = vpop.f32.mrf.mxu1 }
 0x11c   :  { %v1769_v33 = vpop.f32.mrf.mxu1 }
 0x124   :  { %v296_v34 = vpop.f32.mrf.mxu1 }
 0x125   :  { %v338_v31 = vmax.f32 %v296_v34, 0.0 }
 0x12c   :  { %v299_v35 = vpop.f32.mrf.mxu1 }
 0x12d   :  { %v339_v8 = vmax.f32 %v299_v35, 0.0  ;;  %v358_v35 = vmul.f32 %v1776_v43, %v338_v31 }
 0x12f   :  { %v359_v13 = vmul.f32 %v1776_v43, %v339_v8 }
 0x134   :  { %v302_v36 = vpop.f32.mrf.mxu1 }
 0x135   :  { %v340_v55 = vmax.f32 %v302_v36, 0.0 }
 0x137   :  { %v360_v58 = vmul.f32 %v1776_v43, %v340_v55 }
 0x139   :  { %v387_v60 = vsel %vm371_vm1, %v360_v58, 0.0 }
 0x13c   :  { %v305_v37 = vpop.f32.mrf.mxu1 }
 0x13d   :  { %v341_v49 = vmax.f32 %v305_v37, 0.0  ;;  %v384_v37 = vsel %vm371_vm1, %v359_v13, 0.0 }
 0x13f   :  { %v361_v53 = vmul.f32 %v1776_v43, %v341_v49 }
 0x141   :  { %v390_v56 = vsel %vm371_vm1, %v361_v53, 0.0  ;;  %v1567_v53 = vmov 0  }
 0x142   :  { %1416 = vset.pattern.permute.xlu1 %v1567_v53  ;;  %1417 = vset.pattern.permute.xlu2 %v1567_v53 }
 0x143   :  { %1418 = vset.pattern.permute.xlu0 %v1567_v53 }
 0x144   :  { %v1771_v38 = vpop.f32.mrf.mxu1 }
 0x14c   :  { %v311_v39 = vpop.f32.mrf.mxu1 }
 0x14d   :  { %v343_v36 = vmax.f32 %v311_v39, 0.0  ;;  %v337_v39 = vmax.f32 %v1769_v33, 0.0 }
 0x154   :  { %v314_v40 = vpop.f32.mrf.mxu1 }
 0x155   :  { %v344_v1 = vmax.f32 %v314_v40, 0.0 }
 0x157   :  { %v364_v6 = vmul.f32 %v1776_v43, %v344_v1 }
 0x159   :  { %v399_v9 = vsel %vm371_vm1, %v364_v6, 0.0 }
 0x15c   :  { %v317_v41 = vpop.f32.mrf.mxu1 }
 0x15d   :  { %v345_v42 = vmax.f32 %v317_v41, 0.0  ;;  %v363_v41 = vmul.f32 %v1776_v43, %v343_v36 }
 0x15f   :  { %v365_v44 = vmul.f32 %v1776_v43, %v345_v42  ;;  %v342_v42 = vmax.f32 %v1771_v38, 0.0 }
 0x161   :  { %v402_v45 = vsel %vm371_vm1, %v365_v44, 0.0  ;;  %v381_v44 = vsel %vm371_vm1, %v358_v35, 0.0  ;;  %v362_v34 = vmul.f32 %v1776_v43, %v342_v42 }
 0x162   :  { %403 = vadd.xlane.f32.xlu2 %v402_v45  ;;  %v396_v45 = vsel %vm371_vm1, %v363_v41, 0.0 }
 0x164   :  { %v320_v46 = vpop.f32.mrf.mxu1 }
 0x165   :  { %v346_v47 = vmax.f32 %v320_v46, 0.0  ;;  %v393_v46 = vsel %vm371_vm1, %v362_v34, 0.0 }
 0x167   :  { %v366_v48 = vmul.f32 %v1776_v43, %v346_v47  ;;  %v357_v47 = vmul.f32 %v1776_v43, %v337_v39 }
 0x169   :  { %v405_v50 = vsel %vm371_vm1, %v366_v48, 0.0  ;;  %v336_v48 = vmax.f32 %v1767_v32, 0.0  ;;  %v378_v49 = vsel %vm371_vm1, %v357_v47, 0.0 }
 0x16a   :  { %406 = vadd.xlane.f32.xlu2 %v405_v50 }
 0x16b   :  { %v356_v38 = vmul.f32 %v1776_v43, %v336_v48 }
 0x16c   :  { %v323_v51 = vpop.f32.mrf.mxu1 }
 0x16d   :  { %v347_v52 = vmax.f32 %v323_v51, 0.0  ;;  %v375_v50 = vsel %vm371_vm1, %v356_v38, 0.0  ;;  %v1813_v51 = vld [vmem:[#allocation3] ss:$0 sm:$0xff] }
 0x16f   :  { %v367_v54 = vmul.f32 %v1776_v43, %v347_v52 }
 0x171   :  { %v408_v57 = vsel %vm371_vm1, %v367_v54, 0.0 }
 0x172   :  { %391 = vadd.xlane.f32.xlu2 %v390_v56  ;;  %409 = vadd.xlane.f32.xlu1 %v408_v57 }
 0x17a   :  { %388 = vadd.xlane.f32.xlu2 %v387_v60  ;;  %v326_v61 = vpop.f32.mrf.mxu3 }
 0x17b   :  { %v348_v62 = vmax.f32 %v326_v61, 0.0 }
 0x17d   :  { %v368_v63 = vmul.f32 %v1776_v43, %v348_v62 }
 0x17f   :  { %v411_v2 = vsel %vm371_vm1, %v368_v63, 0.0 }
 0x180   :  { %412 = vadd.xlane.f32.xlu1 %v411_v2 }
 0x182   :  { %373 = vadd.xlane.f32.xlu2 %v372_v3  ;;  %v329_v4 = vpop.f32.mrf.mxu3 }
 0x183   :  { %v349_v5 = vmax.f32 %v329_v4, 0.0 }
 0x185   :  { %v369_v7 = vmul.f32 %v1776_v43, %v349_v5 }
 0x187   :  { %v414_v10 = vsel %vm371_vm1, %v369_v7, 0.0 }
 0x188   :  { %400 = vadd.xlane.f32.xlu1 %v399_v9  ;;  %415 = vadd.xlane.f32.xlu0 %v414_v10 }
 0x18a   :  { %v332_v11 = vpop.f32.mrf.mxu3 }
 0x18b   :  { %v350_v12 = vmax.f32 %v332_v11, 0.0 }
 0x18d   :  { %v370_v14 = vmul.f32 %v1776_v43, %v350_v12 }
 0x18f   :  { %v417_v40 = vsel %vm371_vm1, %v370_v14, 0.0 }
 0x190   :  { %385 = vadd.xlane.f32.xlu1 %v384_v37  ;;  %418 = vadd.xlane.f32.xlu0 %v417_v40 }
 0x198   :  { %382 = vadd.xlane.f32.xlu1 %v381_v44  ;;  %397 = vadd.xlane.f32.xlu0 %v396_v45 }
 0x1a0   :  { %394 = vadd.xlane.f32.xlu0 %v393_v46 }
 0x1a8   :  { %379 = vadd.xlane.f32.xlu0 %v378_v49 }
 0x1b0   :  { %376 = vadd.xlane.f32.xlu0 %v375_v50 }
 0x1d5   :  { %v404_v52 = vpop.xlane.xlu2 %403 }
 0x1d6   :  { %v434_v33 = vadd.f32 %v1813_v51, %v404_v52 }
 0x1d8   :  { %v1360_v54 = vmul.f32 -1.442695, %v434_v33 }
 0x1da   :  { %1424 = vpow2.f32 %v1360_v54 }
 0x1dd   :  { %v407_v32 = vpop.xlane.xlu2 %406 }
 0x1de   :  { %v435_v55 = vadd.f32 %v1813_v51, %v407_v32 }
 0x1e0   :  { %v1425_v56 = vpop.eup %1424  ;;  %v1361_v57 = vmul.f32 -1.442695, %v435_v55 }
 0x1e1   :  { %v498_v43 = vadd.f32 1.0, %v1425_v56 }
 0x1e2   :  { %1426 = vpow2.f32 %v1361_v57 }
 0x1e3   :  { %1428 = vrcp.f32 %v498_v43  ;;  %v665_v6 = vand.u32 2147483648, %v498_v43  ;;  %v663_v9 = vand.u32 2147483647, %v498_v43  ;;  %vm659_vm3 = vweird.f32 %v498_v43 }
 0x1e5   :  { %v392_v58 = vpop.xlane.xlu2 %391  ;;  %v410_v59 = vpop.xlane.xlu1 %409  ;;  %v666_v31 = vor.u32 1.1754944e-38, %v665_v6  ;;  %vm664_vm6 = vcmp.eq.f32.partialorder %v663_v9, 8.507059e+37 }
 0x1e6   :  { %v430_v60 = vadd.f32 %v1813_v51, %v392_v58  ;;  %v436_v61 = vadd.f32 %v1813_v51, %v410_v59 }
 0x1e8   :  { %v1427_v62 = vpop.eup %1426  ;;  %v1356_v63 = vmul.f32 -1.442695, %v430_v60  ;;  %v1362_v0 = vmul.f32 -1.442695, %v436_v61 }
 0x1e9   :  { %v1429_v1 = vpop.eup %1428  ;;  %v499_v2 = vadd.f32 1.0, %v1427_v62 }
 0x1ea   :  { %1430 = vpow2.f32 %v1356_v63  ;;  %v655_v3 = vmul.f32 %v1429_v1, %v498_v43  ;;  %vm660_vm2 = vweird.f32 %v1429_v1 }
 0x1eb   :  { %1432 = vrcp.f32 %v499_v2  ;;  %vm661_vm4 = vmor %vm659_vm3, %vm660_vm2  ;;  %v678_v39 = vand.u32 2147483647, %v499_v2  ;;  %v680_v46 = vand.u32 2147483648, %v499_v2  ;;  %vm674_vm8 = vweird.f32 %v499_v2 }
 0x1ec   :  { %1434 = vpow2.f32 %v1362_v0  ;;  %v656_v4 = vsub.f32 1.0, %v655_v3 }
 0x1ed   :  { %v389_v5 = vpop.xlane.xlu2 %388  ;;  %v681_v54 = vor.u32 1.1754944e-38, %v680_v46  ;;  %vm679_vm10 = vcmp.eq.f32.partialorder %v678_v39, 8.507059e+37 }
 0x1ee   :  { %v429_v7 = vadd.f32 %v1813_v51, %v389_v5  ;;  %v657_v8 = vmul.f32 %v1429_v1, %v656_v4 }
 0x1f0   :  { %v1431_v10 = vpop.eup %1430  ;;  %v1355_v11 = vmul.f32 -1.442695, %v429_v7  ;;  %v658_v12 = vadd.f32 %v1429_v1, %v657_v8 }
 0x1f1   :  { %v1433_v13 = vpop.eup %1432  ;;  %v1820_v14 = vadd.f32 1.0, %v1431_v10 }
 0x1f2   :  { %v1435_v36 = vpop.eup %1434  ;;  %1436 = vpow2.f32 %v1355_v11  ;;  %v662_v37 = vsel %vm661_vm4, %v1429_v1, %v658_v12  ;;  %v670_v40 = vmul.f32 %v1433_v13, %v499_v2  ;;  %vm675_vm7 = vweird.f32 %v1433_v13 }
 0x1f3   :  { %1438 = vrcp.f32 %v1820_v14  ;;  %v1823_v35 = vadd.f32 1.0, %v1435_v36  ;;  %v413_v41 = vpop.xlane.xlu1 %412  ;;  %v667_v42 = vsel %vm664_vm6, %v666_v31, %v662_v37  ;;  %vm676_vm9 = vmor %vm674_vm8, %vm675_vm7  ;;  %v605_v9 = vand.u32 2147483648, %v1820_v14 }
 0x1f4   :  { %v437_v44 = vadd.f32 %v1813_v51, %v413_v41  ;;  %755 = vst.msk [vmem:[%s2224_s12 + $0x50] sm:$0xff] %vm744_vm5, %v667_v42  ;;  %813 = vperm.xlu1 %1416, %v667_v42   ;;  %v671_v45 = vsub.f32 1.0, %v670_v40  ;;  %vm599_vm12 = vweird.f32 %v1820_v14  ;;  %v603_v11 = vand.u32 2147483647, %v1820_v14 }
 0x1f5   :  { %1440 = vrcp.f32 %v1823_v35  ;;  %v374_v34 = vpop.xlane.xlu2 %373  ;;  %v693_v4 = vand.u32 2147483647, %v1823_v35  ;;  %v695_v5 = vand.u32 2147483648, %v1823_v35  ;;  %vm689_vm14 = vweird.f32 %v1823_v35 }
 0x1f6   :  { %v1363_v47 = vmul.f32 -1.442695, %v437_v44  ;;  %v424_v48 = vadd.f32 %v1813_v51, %v374_v34  ;;  %v672_v49 = vmul.f32 %v1433_v13, %v671_v45  ;;  %vm604_vm3 = vcmp.eq.f32.partialorder %v603_v11, 8.507059e+37 }
 0x1f7   :  { %vm694_vm1 = vcmp.eq.f32.partialorder %v693_v4, 8.507059e+37  ;;  %v696_v40 = vor.u32 1.1754944e-38, %v695_v5 }
 0x1f8   :  { %v1437_v38 = vpop.eup %1436  ;;  %1442 = vpow2.f32 %v1363_v47  ;;  %v1350_v50 = vmul.f32 -1.442695, %v424_v48  ;;  %v673_v52 = vadd.f32 %v1433_v13, %v672_v49 }
 0x1f9   :  { %v1832_v53 = vpop.eup %1438  ;;  %v1834_v33 = vadd.f32 1.0, %v1437_v38 }
 0x1fa   :  { %1444 = vpow2.f32 %v1350_v50  ;;  %v677_v32 = vsel %vm676_vm9, %v1433_v13, %v673_v52  ;;  %v595_v55 = vmul.f32 %v1832_v53, %v1820_v14  ;;  %vm600_vm13 = vweird.f32 %v1832_v53 }
 0x1fb   :  { %v1441_v56 = vpop.eup %1440  ;;  %1446 = vrcp.f32 %v1834_v33  ;;  %v401_v57 = vpop.xlane.xlu1 %400  ;;  %v682_v58 = vsel %vm679_vm10, %v681_v54, %v677_v32  ;;  %vm601_vm2 = vmor %vm599_vm12, %vm600_vm13  ;;  %vm584_vm6 = vweird.f32 %v1834_v33 }
 0x1fc   :  { %v416_v43 = vpop.xlane.xlu0 %415  ;;  %v433_v59 = vadd.f32 %v1813_v51, %v401_v57  ;;  %818 = vperm.xlu2 %1417, %v682_v58   ;;  %756 = vst.msk [vmem:[%s2224_s12 + $0x58] sm:$0xff] %vm744_vm5, %v682_v58  ;;  %v685_v61 = vmul.f32 %v1441_v56, %v1823_v35  ;;  %v596_v62 = vsub.f32 1.0, %v595_v55  ;;  %vm690_vm11 = vweird.f32 %v1441_v56 }
 0x1fd   :  { %v438_v60 = vadd.f32 %v1813_v51, %v416_v43  ;;  %vm691_vm15 = vmor %vm689_vm14, %vm690_vm11  ;;  %v606_v35 = vor.u32 1.1754944e-38, %v605_v9 }
 0x1fe   :  { %v1443_v63 = vpop.eup %1442  ;;  %v1359_v0 = vmul.f32 -1.442695, %v433_v59  ;;  %v686_v2 = vsub.f32 1.0, %v685_v61  ;;  %v597_v6 = vmul.f32 %v1832_v53, %v596_v62 }
 0x1ff   :  { %v1364_v1 = vmul.f32 -1.442695, %v438_v60  ;;  %v1846_v3 = vadd.f32 1.0, %v1443_v63 }
 0x200   :  { %v1445_v7 = vpop.eup %1444  ;;  %1448 = vpow2.f32 %v1359_v0  ;;  %v687_v8 = vmul.f32 %v1441_v56, %v686_v2  ;;  %v598_v13 = vadd.f32 %v1832_v53, %v597_v6 }
 0x201   :  { %v1852_v10 = vpop.eup %1446  ;;  %1450 = vrcp.f32 %v1846_v3  ;;  %v1860_v31 = vadd.f32 1.0, %v1445_v7  ;;  %v708_v60 = vand.u32 2147483647, %v1846_v3  ;;  %v710_v61 = vand.u32 2147483648, %v1846_v3 }
 0x202   :  { %1452 = vpow2.f32 %v1364_v1  ;;  %v688_v12 = vadd.f32 %v1441_v56, %v687_v8  ;;  %v580_v41 = vmul.f32 %v1852_v10, %v1834_v33  ;;  %v602_v39 = vsel %vm601_vm2, %v1832_v53, %v598_v13 }
 0x203   :  { %v386_v36 = vpop.xlane.xlu1 %385  ;;  %v1875_v38 = vsel %vm604_vm3, %v606_v35, %v602_v39  ;;  %1454 = vrcp.f32 %v1860_v31  ;;  %v590_v53 = vand.u32 2147483648, %v1834_v33  ;;  %vm585_vm4 = vweird.f32 %v1852_v10 }
 0x204   :  { %v419_v37 = vpop.xlane.xlu0 %418  ;;  %v428_v42 = vadd.f32 %v1813_v51, %v386_v36  ;;  %v692_v45 = vsel %vm691_vm15, %v1441_v56, %v688_v12  ;;  %v581_v46 = vsub.f32 1.0, %v580_v41  ;;  %751 = vst.msk [vmem:[%s2224_s12 + $0x30] sm:$0xff] %vm744_vm5, %v1875_v38  ;;  %v588_v56 = vand.u32 2147483647, %v1834_v33  ;;  %vm586_vm8 = vmor %vm584_vm6, %vm585_vm4 }
 0x205   :  { %v439_v44 = vadd.f32 %v1813_v51, %v419_v37  ;;  %v697_v34 = vsel %vm694_vm1, %v696_v40, %v692_v45  ;;  %v591_v62 = vor.u32 1.1754944e-38, %v590_v53  ;;  %vm704_vm9 = vweird.f32 %v1846_v3 }
 0x206   :  { %v1449_v47 = vpop.eup %1448  ;;  %v1354_v48 = vmul.f32 -1.442695, %v428_v42  ;;  %757 = vst.msk [vmem:[%s2224_s12 + $0x60] sm:$0xff] %vm744_vm5, %v697_v34  ;;  %823 = vperm.xlu0 %1418, %v697_v34   ;;  %v582_v52 = vmul.f32 %v1852_v10, %v581_v46  ;;  %vm589_vm10 = vcmp.eq.f32.partialorder %v588_v56, 8.507059e+37  ;;  %vm709_vm12 = vcmp.eq.f32.partialorder %v708_v60, 8.507059e+37 }
 0x207   :  { %v1365_v49 = vmul.f32 -1.442695, %v439_v44  ;;  %v1451_v50 = vpop.eup %1450  ;;  %v1878_v14 = vadd.f32 1.0, %v1449_v47  ;;  %v711_v12 = vor.u32 1.1754944e-38, %v710_v61  ;;  %v513_v34 = vand.u32 2147483647, %v1860_v31 }
 0x208   :  { %v1453_v54 = vpop.eup %1452  ;;  %1456 = vpow2.f32 %v1354_v48  ;;  %v700_v32 = vmul.f32 %v1451_v50, %v1846_v3  ;;  %v583_v43 = vadd.f32 %v1852_v10, %v582_v52  ;;  %vm705_vm7 = vweird.f32 %v1451_v50 }
 0x209   :  { %1458 = vrcp.f32 %v1878_v14  ;;  %v1889_v55 = vadd.f32 1.0, %v1453_v54  ;;  %v1902_v2 = vpop.eup %1454  ;;  %vm706_vm11 = vmor %vm704_vm9, %vm705_vm7  ;;  %v515_v3 = vand.u32 2147483648, %v1860_v31  ;;  %v648_v37 = vand.u32 2147483647, %v1878_v14 }
 0x20a   :  { %1460 = vpow2.f32 %v1365_v49  ;;  %v701_v57 = vsub.f32 1.0, %v700_v32  ;;  %v587_v33 = vsel %vm586_vm8, %v1852_v10, %v583_v43  ;;  %v650_v47 = vand.u32 2147483648, %v1878_v14 }
 0x20b   :  { %1462 = vrcp.f32 %v1889_v55  ;;  %v383_v58 = vpop.xlane.xlu1 %382  ;;  %v1906_v8 = vsel %vm589_vm10, %v591_v62, %v587_v33  ;;  %v723_v44 = vand.u32 2147483647, %v1889_v55  ;;  %v725_v46 = vand.u32 2147483648, %v1889_v55 }
 0x20c   :  { %v398_v59 = vpop.xlane.xlu0 %397  ;;  %v427_v63 = vadd.f32 %v1813_v51, %v383_v58  ;;  %v702_v1 = vmul.f32 %v1451_v50, %v701_v57  ;;  %750 = vst.msk [vmem:[%s2224_s12 + $0x28] sm:$0xff] %vm744_vm5, %v1906_v8  ;;  %v505_v48 = vmul.f32 %v1902_v2, %v1860_v31  ;;  %vm719_vm14 = vweird.f32 %v1889_v55 }
 0x20d   :  { %v432_v0 = vadd.f32 %v1813_v51, %v398_v59  ;;  %vm1935_vm15 = vcmp.eq.f32.partialorder %v723_v44, 8.507059e+37  ;;  %vm644_vm1 = vweird.f32 %v1878_v14  ;;  %vm1940_vm2 = vcmp.eq.f32.partialorder %v648_v37, 8.507059e+37 }
 0x20e   :  { %v1457_v4 = vpop.eup %1456  ;;  %v1353_v5 = vmul.f32 -1.442695, %v427_v63  ;;  %v703_v7 = vadd.f32 %v1451_v50, %v702_v1  ;;  %v726_v60 = vor.u32 1.1754944e-38, %v725_v46  ;;  %v651_v61 = vor.u32 1.1754944e-38, %v650_v47 }
 0x20f   :  { %v1358_v6 = vmul.f32 -1.442695, %v432_v0  ;;  %v1459_v9 = vpop.eup %1458  ;;  %v1908_v11 = vadd.f32 1.0, %v1457_v4  ;;  %v506_v62 = vsub.f32 1.0, %v505_v48  ;;  %vm510_vm7 = vweird.f32 %v1902_v2 }
 0x210   :  { %v1461_v10 = vpop.eup %1460  ;;  %1464 = vpow2.f32 %v1353_v5  ;;  %v707_v13 = vsel %vm706_vm11, %v1451_v50, %v703_v7  ;;  %v640_v36 = vmul.f32 %v1459_v9, %v1878_v14  ;;  %vm645_vm13 = vweird.f32 %v1459_v9 }
 0x211   :  { %v1463_v40 = vpop.eup %1462  ;;  %1466 = vrcp.f32 %v1908_v11  ;;  %v1919_v41 = vadd.f32 1.0, %v1461_v10  ;;  %v712_v42 = vsel %vm709_vm12, %v711_v12, %v707_v13  ;;  %vm646_vm4 = vmor %vm644_vm1, %vm645_vm13  ;;  %v573_v12 = vand.u32 2147483647, %v1908_v11 }
 0x212   :  { %1468 = vpow2.f32 %v1358_v6  ;;  %828 = vperm.xlu2 %1417, %v712_v42   ;;  %758 = vst.msk [vmem:[%s2224_s12 + $0x68] sm:$0xff] %vm744_vm5, %v712_v42  ;;  %v715_v45 = vmul.f32 %v1463_v40, %v1889_v55  ;;  %v641_v35 = vsub.f32 1.0, %v640_v36  ;;  %vm720_vm3 = vweird.f32 %v1463_v40 }
 0x213   :  { %1470 = vrcp.f32 %v1919_v41  ;;  %vm721_vm6 = vmor %vm719_vm14, %vm720_vm3  ;;  %v575_v13 = vand.u32 2147483648, %v1908_v11  ;;  %v507_v36 = vmul.f32 %v1902_v2, %v506_v62  ;;  %vm734_vm9 = vweird.f32 %v1919_v41 }
 0x214   :  { %v395_v39 = vpop.xlane.xlu0 %394  ;;  %v716_v50 = vsub.f32 1.0, %v715_v45  ;;  %v642_v52 = vmul.f32 %v1459_v9, %v641_v35  ;;  %v738_v44 = vand.u32 2147483647, %v1919_v41  ;;  %v740_v45 = vand.u32 2147483648, %v1919_v41 }
 0x215   :  { %v431_v49 = vadd.f32 %v1813_v51, %v395_v39  ;;  %vm569_vm10 = vweird.f32 %v1908_v11  ;;  %vm574_vm13 = vcmp.eq.f32.partialorder %v573_v12, 8.507059e+37  ;;  %vm514_vm3 = vcmp.eq.f32.partialorder %v513_v34, 8.507059e+37 }
 0x216   :  { %v1465_v32 = vpop.eup %1464  ;;  %v717_v57 = vmul.f32 %v1463_v40, %v716_v50  ;;  %v643_v43 = vadd.f32 %v1459_v9, %v642_v52  ;;  %v576_v50 = vor.u32 1.1754944e-38, %v575_v13  ;;  %v508_v52 = vadd.f32 %v1902_v2, %v507_v36 }
 0x217   :  { %v1357_v56 = vmul.f32 -1.442695, %v431_v49  ;;  %v1467_v58 = vpop.eup %1466  ;;  %v1944_v59 = vadd.f32 1.0, %v1465_v32  ;;  %vm739_vm1 = vcmp.eq.f32.partialorder %v738_v44, 8.507059e+37 }
 0x218   :  { %v1469_v63 = vpop.eup %1468  ;;  %v718_v0 = vadd.f32 %v1463_v40, %v717_v57  ;;  %v647_v14 = vsel %vm646_vm4, %v1459_v9, %v643_v43  ;;  %v565_v1 = vmul.f32 %v1467_v58, %v1908_v11  ;;  %vm570_vm8 = vweird.f32 %v1467_v58 }
 0x219   :  { %1472 = vpow2.f32 %v1357_v56  ;;  %v1471_v33 = vpop.eup %1470  ;;  %v1948_v4 = vadd.f32 1.0, %v1469_v63  ;;  %v1955_v5 = vsel %vm1940_vm2, %v651_v61, %v647_v14  ;;  %vm571_vm12 = vmor %vm569_vm10, %vm570_vm8  ;;  %v741_v56 = vor.u32 1.1754944e-38, %v740_v45 }
 0x21a   :  { %1474 = vrcp.f32 %v1944_v59  ;;  %v722_v6 = vsel %vm721_vm6, %v1463_v40, %v718_v0  ;;  %v730_v7 = vmul.f32 %v1471_v33, %v1919_v41  ;;  %754 = vst.msk [vmem:[%s2224_s12 + $0x48] sm:$0xff] %vm744_vm5, %v1955_v5  ;;  %v566_v9 = vsub.f32 1.0, %v565_v1 }
 0x21b   :  { %1476 = vrcp.f32 %v1948_v4  ;;  %v727_v55 = vsel %vm1935_vm15, %v726_v60, %v722_v6  ;;  %vm735_vm11 = vweird.f32 %v1471_v33  ;;  %vm509_vm15 = vweird.f32 %v1860_v31 }
 0x21c   :  { %v380_v10 = vpop.xlane.xlu0 %379  ;;  %833 = vperm.xlu1 %1416, %v727_v55   ;;  %759 = vst.msk [vmem:[%s2224_s12 + $0x70] sm:$0xff] %vm744_vm5, %v727_v55  ;;  %v731_v40 = vsub.f32 1.0, %v730_v7  ;;  %v567_v42 = vmul.f32 %v1467_v58, %v566_v9  ;;  %vm736_vm14 = vmor %vm734_vm9, %vm735_vm11  ;;  %v635_v62 = vand.u32 2147483648, %v1948_v4  ;;  %v560_v14 = vand.u32 2147483648, %v1944_v59 }
 0x21d   :  { %v426_v37 = vadd.f32 %v1813_v51, %v380_v10  ;;  %vm511_vm2 = vmor %vm509_vm15, %vm510_vm7  ;;  %v558_v31 = vand.u32 2147483647, %v1944_v59  ;;  %v633_v12 = vand.u32 2147483647, %v1948_v4  ;;  %vm629_vm7 = vweird.f32 %v1948_v4 }
 0x21e   :  { %v732_v46 = vmul.f32 %v1471_v33, %v731_v40  ;;  %v568_v47 = vadd.f32 %v1467_v58, %v567_v42  ;;  %v512_v1 = vsel %vm511_vm2, %v1902_v2, %v508_v52  ;;  %vm554_vm8 = vweird.f32 %v1944_v59 }
 0x21f   :  { %v1473_v35 = vpop.eup %1472  ;;  %v1352_v39 = vmul.f32 -1.442695, %v426_v37  ;;  %v561_v36 = vor.u32 1.1754944e-38, %v560_v14  ;;  %v636_v37 = vor.u32 1.1754944e-38, %v635_v62  ;;  %vm559_vm11 = vcmp.eq.f32.partialorder %v558_v31, 8.507059e+37 }
 0x220   :  { %v1979_v48 = vpop.eup %1474  ;;  %v1981_v49 = vadd.f32 1.0, %v1473_v35  ;;  %v733_v53 = vadd.f32 %v1471_v33, %v732_v46  ;;  %v572_v54 = vsel %vm571_vm12, %v1467_v58, %v568_v47  ;;  %v516_v58 = vor.u32 1.1754944e-38, %v515_v3 }
 0x221   :  { %1478 = vpow2.f32 %v1352_v39  ;;  %v550_v11 = vmul.f32 %v1979_v48, %v1944_v59  ;;  %v1477_v32 = vpop.eup %1476  ;;  %v1989_v57 = vsel %vm574_vm13, %v576_v50, %v572_v54  ;;  %vm555_vm4 = vweird.f32 %v1979_v48 }
 0x222   :  { %1480 = vrcp.f32 %v1981_v49  ;;  %v737_v43 = vsel %vm736_vm14, %v1471_v33, %v733_v53  ;;  %v625_v60 = vmul.f32 %v1477_v32, %v1948_v4  ;;  %749 = vst.msk [vmem:[%s2224_s12 + $0x20] sm:$0xff] %vm744_vm5, %v1989_v57  ;;  %v2015_v34 = vsel %vm514_vm3, %v516_v58, %v512_v1  ;;  %vm556_vm9 = vmor %vm554_vm8, %vm555_vm4 }
 0x223   :  { %v742_v41 = vsel %vm739_vm1, %v741_v56, %v737_v43  ;;  %v551_v63 = vsub.f32 1.0, %v550_v11  ;;  %vm630_vm6 = vweird.f32 %v1477_v32  ;;  %745 = vst.msk [vmem:[%s2224_s12] sm:$0xff] %vm744_vm5, %v2015_v34  ;;  %vm634_vm12 = vcmp.eq.f32.partialorder %v633_v12, 8.507059e+37 }
 0x224   :  { %v377_v61 = vpop.xlane.xlu0 %376  ;;  %838 = vperm.xlu2 %1417, %v742_v41   ;;  %760 = vst.msk [vmem:[%s2224_s12 + $0x78] sm:$0xff] %vm744_vm5, %v742_v41  ;;  %v626_v3 = vsub.f32 1.0, %v625_v60  ;;  %vm631_vm10 = vmor %vm629_vm7, %vm630_vm6  ;;  %v620_v59 = vand.u32 2147483648, %v1981_v49  ;;  %v618_v39 = vand.u32 2147483647, %v1981_v49  ;;  %vm614_vm14 = vweird.f32 %v1981_v49 }
 0x225   :  { %v425_v0 = vadd.f32 %v1813_v51, %v377_v61  ;;  %v552_v33 = vmul.f32 %v1979_v48, %v551_v63 }
 0x226   :  { %v627_v9 = vmul.f32 %v1477_v32, %v626_v3  ;;  %v621_v52 = vor.u32 1.1754944e-38, %v620_v59  ;;  %vm619_vm1 = vcmp.eq.f32.partialorder %v618_v39, 8.507059e+37  ;;  %v865_v39 = vlaneseq }
 0x227   :  { %v1479_v6 = vpop.eup %1478  ;;  %v1351_v7 = vmul.f32 -1.442695, %v425_v0  ;;  %v553_v55 = vadd.f32 %v1979_v48, %v552_v33 }
 0x228   :  { %v1481_v51 = vpop.eup %1480  ;;  %v490_v2 = vadd.f32 1.0, %v1479_v6  ;;  %v628_v10 = vadd.f32 %v1477_v32, %v627_v9 }
 0x229   :  { %1482 = vpow2.f32 %v1351_v7  ;;  %v610_v13 = vmul.f32 %v1481_v51, %v1981_v49  ;;  %v557_v40 = vsel %vm556_vm9, %v1979_v48, %v553_v55  ;;  %vm615_vm13 = vweird.f32 %v1481_v51 }
 0x22a   :  { %1484 = vrcp.f32 %v490_v2  ;;  %v632_v42 = vsel %vm631_vm10, %v1477_v32, %v628_v10  ;;  %v562_v44 = vsel %vm559_vm11, %v561_v36, %v557_v40  ;;  %vm616_vm15 = vmor %vm614_vm14, %vm615_vm13  ;;  %v545_v32 = vand.u32 2147483648, %v490_v2 }
 0x22b   :  { %v611_v4 = vsub.f32 1.0, %v610_v13  ;;  %v637_v45 = vsel %vm634_vm12, %v636_v37, %v632_v42  ;;  %748 = vst.msk [vmem:[%s2224_s12 + $0x18] sm:$0xff] %vm744_vm5, %v562_v44  ;;  %v543_v56 = vand.u32 2147483647, %v490_v2  ;;  %vm539_vm3 = vweird.f32 %v490_v2 }
 0x22c   :  { %808 = vperm.xlu2 %1417, %v1955_v5   ;;  %803 = vperm.xlu1 %1416, %v637_v45   ;;  %753 = vst.msk [vmem:[%s2224_s12 + $0x40] sm:$0xff] %vm744_vm5, %v637_v45  ;;  %v546_v58 = vor.u32 1.1754944e-38, %v545_v32 }
 0x22d   :  { %v612_v35 = vmul.f32 %v1481_v51, %v611_v4  ;;  %vm544_vm6 = vcmp.eq.f32.partialorder %v543_v56, 8.507059e+37 }
 0x22f   :  { %v1483_v46 = vpop.eup %1482  ;;  %v613_v47 = vadd.f32 %v1481_v51, %v612_v35 }
 0x230   :  { %v1485_v48 = vpop.eup %1484  ;;  %v489_v50 = vadd.f32 1.0, %v1483_v46 }
 0x231   :  { %v617_v53 = vsel %vm616_vm15, %v1481_v51, %v613_v47  ;;  %v535_v5 = vmul.f32 %v1485_v48, %v490_v2  ;;  %vm540_vm2 = vweird.f32 %v1485_v48 }
 0x232   :  { %1486 = vrcp.f32 %v489_v50  ;;  %v622_v54 = vsel %vm619_vm1, %v621_v52, %v617_v53  ;;  %vm541_vm4 = vmor %vm539_vm3, %vm540_vm2  ;;  %v528_v0 = vand.u32 2147483647, %v489_v50  ;;  %vm524_vm8 = vweird.f32 %v489_v50  ;;  %v929_v52 = vld [vmem:[%s2219_s7 + $0x8] sm:$0xff] }
 0x233   :  { %798 = vperm.xlu0 %1418, %v622_v54   ;;  %752 = vst.msk [vmem:[%s2224_s12 + $0x38] sm:$0xff] %vm744_vm5, %v622_v54  ;;  %v536_v11 = vsub.f32 1.0, %v535_v5 }
 0x234   :  { %783 = vperm.xlu2 %1417, %v1989_v57   ;;  %793 = vperm.xlu1 %1416, %v1875_v38   ;;  %v530_v38 = vand.u32 2147483648, %v489_v50  ;;  %vm529_vm10 = vcmp.eq.f32.partialorder %v528_v0, 8.507059e+37 }
 0x235   :  { %v537_v49 = vmul.f32 %v1485_v48, %v536_v11  ;;  %v1421_v11 = vld [vmem:[%s2212_s0] ss:$0 sm:$0xff] }
 0x236   :  { %v531_v14 = vor.u32 1.1754944e-38, %v530_v38  ;;  %v1027_v38 = vld [vmem:[#allocation4 + $0x8] sm:$0xff] }
 0x237   :  { %v538_v43 = vadd.f32 %v1485_v48, %v537_v49 }
 0x238   :  { %v1487_v60 = vpop.eup %1486 }
 0x239   :  { %v542_v41 = vsel %vm541_vm4, %v1485_v48, %v538_v43  ;;  %v520_v61 = vmul.f32 %v1487_v60, %v489_v50  ;;  %vm525_vm7 = vweird.f32 %v1487_v60  ;;  %v1568_v48 = vmov 0.0  }
 0x23a   :  { %v547_v62 = vsel %vm544_vm6, %v546_v58, %v542_v41  ;;  %vm526_vm9 = vmor %vm524_vm8, %vm525_vm7  ;;  %68 = vst.msk [vmem:[#allocation2] sm:$0xff] %vm67_vm0, %v1568_v48  ;;  %v866_v50 = vshrl.u32 %v865_v39, 7 }
 0x23b   :  { %773 = vperm.xlu0 %1418, %v547_v62   ;;  %747 = vst.msk [vmem:[%s2224_s12 + $0x10] sm:$0xff] %vm744_vm5, %v547_v62  ;;  %v521_v57 = vsub.f32 1.0, %v520_v61  ;;  %v1029_v62 = vld [vmem:[#allocation4 + $0x18] sm:$0xff] }
 0x23c   :  { %778 = vperm.xlu2 %1417, %v562_v44   ;;  %788 = vperm.xlu1 %1416, %v1906_v8   ;;  %69 = vst.msk [vmem:[#allocation2 + $0x8] sm:$0xff] %vm67_vm0, %v1568_v48  ;;  %v867_v54 = vadd.s32 8, %v866_v50  ;;  %v869_v58 = vadd.s32 24, %v866_v50 }
 0x23d   :  { %v522_v63 = vmul.f32 %v1487_v60, %v521_v57  ;;  %70 = vst.msk [vmem:[#allocation2 + $0x10] sm:$0xff] %vm67_vm0, %v1568_v48  ;;  %v1028_v57 = vld [vmem:[#allocation4 + $0x10] sm:$0xff] }
 0x23e   :  { %71 = vst.msk [vmem:[#allocation2 + $0x18] sm:$0xff] %vm67_vm0, %v1568_v48  ;;  %vm873_vm11 = vcmp.eq.s32.totalorder %v867_v54, %v1421_v11  ;;  %vm875_vm14 = vcmp.eq.s32.totalorder %v869_v58, %v1421_v11  ;;  %v1423_v48 = vld [vmem:[%s2222_s10] ss:$0 sm:$0xff]  ;;  %s1571_s10 = smov 32  }
 0x23f   :  { %v523_v3 = vadd.f32 %v1487_v60, %v522_v63  ;;  %v980_v63 = vld [vmem:[%s2220_s8 + $0x18] sm:$0xff] }
 0x241   :  { %v527_v1 = vsel %vm526_vm9, %v1487_v60, %v523_v3  ;;  %v868_v60 = vadd.s32 16, %v866_v50  ;;  %v979_v3 = vld [vmem:[%s2220_s8 + $0x10] sm:$0xff] }
 0x242   :  { %v532_v33 = vsel %vm529_vm10, %v531_v14, %v527_v1  ;;  %v1026_v14 = vld [vmem:[#allocation4] sm:$0xff] }
 0x243   :  { %768 = vperm.xlu0 %1418, %v532_v33   ;;  %746 = vst.msk [vmem:[%s2224_s12 + $0x8] sm:$0xff] %vm744_vm5, %v532_v33  ;;  %vm872_vm5 = vcmp.eq.s32.totalorder %v866_v50, %v1421_v11  ;;  %vm874_vm13 = vcmp.eq.s32.totalorder %v868_v60, %v1421_v11  ;;  %v887_v0 = vld [vmem:[#allocation2 + $0x8] sm:$0xff] }
 0x244   :  { %763 = vperm.xlu1 %1416, %v2015_v34   ;;  %vm1370_vm12 = vmpackc.low %vm873_vm11, %vm872_vm5  ;;  %v978_v1 = vld [vmem:[%s2220_s8 + $0x8] sm:$0xff] }
 0x245   :  { %vm1372_vm15 = vmpackc.low %vm875_vm14, %vm874_vm13 }
 0x256   :  { %v819_v31 = vpop.permute.xlu2 %818 }
 0x257   :  { %v852_v34 = vmul.f32 %v819_v31, %v1747_v26  ;;  %v2106_v31 = vld [vmem:[%s2218_s6] sm:$0xff] }
 0x266   :  { %v814_v6 = vpop.permute.xlu1 %813 }
 0x267   :  { %v851_v36 = vmul.f32 %v814_v6, %v1743_v25  ;;  %v977_v6 = vld [vmem:[%s2220_s8] sm:$0xff] }
 0x269   :  { %v862_v40 = vpack.c.bf16 %v852_v34, %v851_v36  ;;  %v2127_v36 = vld [vmem:[%s2218_s6 + $0x10] sm:$0xff] }
 0x26c   :  { %v829_v8 = vpop.permute.xlu2 %828 }
 0x26d   :  { %v854_v13 = vmul.f32 %v829_v8, %v1755_v28 }
 0x278   :  { %v824_v9 = vpop.permute.xlu0 %823 }
 0x279   :  { %v853_v55 = vmul.f32 %v824_v9, %v1751_v27  ;;  %v888_v9 = vld [vmem:[#allocation2 + $0x10] sm:$0xff] }
 0x27b   :  { %v863_v37 = vpack.c.bf16 %v854_v13, %v853_v55 }
 0x27e   :  { %v839_v7 = vpop.permute.xlu2 %838 }
 0x27f   :  { %v856_v51 = vmul.f32 %v839_v7, %v1763_v30 }
 0x286   :  { %v809_v42 = vpop.permute.xlu2 %808 }
 0x287   :  { %v850_v30 = vmul.f32 %v809_v42, %v1739_v24  ;;  %v931_v24 = vld [vmem:[%s2219_s7 + $0x18] sm:$0xff] }
 0x288   :  { %956 = vmatpush.msra.mxu3 %v931_v24 }
 0x28e   :  { %v834_v12 = vpop.permute.xlu1 %833  ;;  %v784_v45 = vpop.permute.xlu2 %783 }
 0x28f   :  { %v855_v2 = vmul.f32 %v834_v12, %v1759_v29  ;;  %v845_v47 = vmul.f32 %v784_v45, %v1719_v19 }
 0x291   :  { %v864_v10 = vpack.c.bf16 %v856_v51, %v855_v2  ;;  %v2118_v51 = vld [vmem:[%s2218_s6 + $0x8] sm:$0xff] }
 0x293   :  { %890 = vmatpush.bf16.msra.mxu2 %v864_v10  ;;  %v889_v10 = vld [vmem:[#allocation2 + $0x18] sm:$0xff] }
 0x297   :  { %891 = vmatpush.bf16.msra.mxu2 %v863_v37 }
 0x29b   :  { %892 = vmatpush.bf16.msra.mxu2 %v862_v40  ;;  %v2136_v40 = vld [vmem:[%s2218_s6 + $0x18] sm:$0xff] }
 0x29e   :  { %v804_v4 = vpop.permute.xlu1 %803 }
 0x29f   :  { %v849_v29 = vmul.f32 %v804_v4, %v1735_v23  ;;  %v930_v23 = vld [vmem:[%s2219_s7 + $0x10] sm:$0xff]  ;;  %v1422_v4 = vld [vmem:[%s2223_s11] ss:$0 sm:$0xff] }
 0x2a0   :  { %957 = vmatpush.msra.mxu3 %v930_v23 }
 0x2a1   :  { %v861_v44 = vpack.c.bf16 %v850_v30, %v849_v29 }
 0x2a2   :  { %958 = vmatpush.msra.mxu3 %v929_v52 }
 0x2a3   :  { %893 = vmatpush.bf16.msra.mxu2 %v861_v44 }
 0x2a5   :  { %v799_v27 = vpop.permute.xlu0 %798 }
 0x2a6   :  { %v848_v28 = vmul.f32 %v799_v27, %v1731_v22  ;;  %v794_v59 = vpop.permute.xlu1 %793 }
 0x2a7   :  { %v847_v25 = vmul.f32 %v794_v59, %v1727_v21  ;;  %v779_v21 = vpop.permute.xlu2 %778 }
 0x2a8   :  { %v844_v19 = vmul.f32 %v779_v21, %v1715_v18  ;;  %v1569_v18 = vmov 1.0|1.0  }
 0x2a9   :  { %v860_v35 = vpack.c.bf16 %v848_v28, %v847_v25 }
 0x2ab   :  { %894 = vmatpush.bf16.msra.mxu2 %v860_v35 }
 0x2ad   :  { %v774_v26 = vpop.permute.xlu0 %773 }
 0x2ae   :  { %v789_v46 = vpop.permute.xlu1 %788  ;;  %v843_v53 = vmul.f32 %v774_v26, %v1711_v17 }
 0x2af   :  { %v846_v22 = vmul.f32 %v789_v46, %v1723_v20 }
 0x2b0   :  { %v858_v49 = vpack.c.bf16 %v844_v19, %v843_v53 }
 0x2b1   :  { %v859_v5 = vpack.c.bf16 %v846_v22, %v845_v47 }
 0x2b3   :  { %895 = vmatpush.bf16.msra.mxu2 %v859_v5 }
 0x2b5   :  { %v769_v20 = vpop.permute.xlu0 %768 }
 0x2b6   :  { %v842_v32 = vmul.f32 %v769_v20, %v1707_v16  ;;  %v764_v17 = vpop.permute.xlu1 %763  ;;  %v928_v16 = vld [vmem:[%s2219_s7] sm:$0xff] }
 0x2b7   :  { %v841_v56 = vmul.f32 %v764_v17, %v1703_v15  ;;  %896 = vmatpush.bf16.msra.mxu2 %v858_v49  ;;  %959 = vmatpush.msra.mxu3 %v928_v16  ;;  %v886_v15 = vld [vmem:[#allocation2] sm:$0xff] }
 0x2b9   :  { %v857_v43 = vpack.c.bf16 %v842_v32, %v841_v56  ;;  %1009 = vmatpush.msrb.mxu3 %v980_v63 }
 0x2bb   :  { %897 = vmatpush.bf16.msra.mxu2 %v857_v43  ;;  %1010 = vmatpush.msrb.mxu3 %v979_v3 }
 0x2bd   :  { %1011 = vmatpush.msrb.mxu3 %v978_v1 }
 0x2be   :  { %1371 = vmatmul.msk.bf16.vlgmr.msra.gmra.mxu2 %vm1370_vm12, %v1569_v18 }
 0x2bf   :  { %1058 = vmatpush.msrb.mxu2 %v1029_v62  ;;  %1012 = vmatpush.msrb.mxu3 %v977_v6 }
 0x2c1   :  { %1059 = vmatpush.msrb.mxu2 %v1028_v57 }
 0x2c3   :  { %1060 = vmatpush.msrb.mxu2 %v1027_v38 }
 0x2c5   :  { %1061 = vmatpush.msrb.mxu2 %v1026_v14 }
 0x2ce   :  { %1373 = vmatmul.msk.bf16.gmra.mxu2 %vm1372_vm15, %v1569_v18 }
 0x2de   :  { %1382 = vmatmul.msk.f32.vlgmr.msrb.gmra.mxu2 %vm67_vm0, %v2106_v31 }
 0x2e6   :  { %1383 = vmatmul.msk.f32.gmra.mxu2 %vm67_vm0, %v2118_v51 }
 0x2ee   :  { %1384 = vmatmul.msk.f32.gmra.mxu2 %vm67_vm0, %v2127_v36 }
 0x2f6   :  { %1385 = vmatmul.msk.f32.gmra.mxu2 %vm67_vm0, %v2136_v40 }
 0x341   :  { %v899_v41 = vpop.f32.mrf.mxu2 }
 0x342   :  { %v909_v61 = vadd.f32 %v899_v41, %v886_v15 }
 0x344   :  { %913 = vst.msk [vmem:[#allocation2] sm:$0xff] %vm67_vm0, %v909_v61 }
 0x349   :  { %v901_v33 = vpop.f32.mrf.mxu2 }
 0x34a   :  { %v910_v8 = vadd.f32 %v901_v33, %v887_v0 }
 0x34b   :  { %v920_v7 = vld [vmem:[#allocation2] sm:$0xff] }
 0x34c   :  { %914 = vst.msk [vmem:[#allocation2 + $0x8] sm:$0xff] %vm67_vm0, %v910_v8  ;;  %1374 = vmatmul.msk.f32.vlgmr.msra.gmra.mxu3 %vm67_vm0, %v920_v7 }
 0x351   :  { %v904_v12 = vpop.f32.mrf.mxu2 }
 0x352   :  { %v911_v2 = vadd.f32 %v904_v12, %v888_v9 }
 0x353   :  { %v921_v55 = vld [vmem:[#allocation2 + $0x8] sm:$0xff] }
 0x354   :  { %915 = vst.msk [vmem:[#allocation2 + $0x10] sm:$0xff] %vm67_vm0, %v911_v2  ;;  %1375 = vmatmul.msk.f32.gmra.mxu3 %vm67_vm0, %v921_v55 }
 0x359   :  { %v906_v13 = vpop.f32.mrf.mxu2 }
 0x35a   :  { %v912_v37 = vadd.f32 %v906_v13, %v889_v10 }
 0x35b   :  { %v922_v34 = vld [vmem:[#allocation2 + $0x10] sm:$0xff] }
 0x35c   :  { %916 = vst.msk [vmem:[#allocation2 + $0x18] sm:$0xff] %vm67_vm0, %v912_v37  ;;  %1376 = vmatmul.msk.f32.gmra.mxu3 %vm67_vm0, %v922_v34 }
 0x361   :  { %v1063_v29 = vpop.f32.mrf.mxu2 }
 0x362   :  { %v1064_v27 = vadd.f32 %v1422_v4, %v1063_v29 }
 0x363   :  { %v923_v42 = vld [vmem:[#allocation2 + $0x18] sm:$0xff] }
 0x364   :  { %1377 = vmatmul.msk.f32.gmra.mxu3 %vm67_vm0, %v923_v42  ;;  %1159 = vrot.lane.b32.xlu2 %v1064_v27, %s1570_s9 }
 0x369   :  { %v1066_v45 = vpop.f32.mrf.mxu2 }
 0x36a   :  { %v1067_v25 = vadd.f32 %v1422_v4, %v1066_v45 }
 0x36c   :  { %1161 = vrot.lane.b32.xlu1 %v1067_v25, %s1570_s9 }
 0x371   :  { %v1069_v26 = vpop.f32.mrf.mxu2 }
 0x372   :  { %v1070_v46 = vadd.f32 %v1422_v4, %v1069_v26 }
 0x374   :  { %1163 = vrot.lane.b32.xlu0 %v1070_v46, %s1570_s9 }
 0x379   :  { %v1072_v23 = vpop.f32.mrf.mxu2 }
 0x37a   :  { %v1073_v22 = vadd.f32 %v1422_v4, %v1072_v23 }
 0x37c   :  { %1165 = vrot.lane.b32.xlu2 %v1073_v22, %s1570_s9 }
 0x3be   :  { %v1160_v8 = vpop.permute.xlu2 %1159 }
 0x3cf   :  { %v961_v30 = vpop.f32.mrf.mxu3 }
 0x3d0   :  { %v973_v44 = vmax.f32 %v961_v30, 0.0 }
 0x3d2   :  { %1378 = vmatmul.msk.f32.vlgmr.msrb.gmra.mxu3 %vm67_vm0, %v973_v44 }
 0x3d7   :  { %v964_v28 = vpop.f32.mrf.mxu3 }
 0x3d8   :  { %v974_v59 = vmax.f32 %v964_v28, 0.0 }
 0x3da   :  { %1379 = vmatmul.msk.f32.gmra.mxu3 %vm67_vm0, %v974_v59 }
 0x3de   :  { %v1162_v29 = vpop.permute.xlu1 %1161 }
 0x3df   :  { %v967_v35 = vpop.f32.mrf.mxu3 }
 0x3e0   :  { %v975_v39 = vmax.f32 %v967_v35, 0.0 }
 0x3e2   :  { %1380 = vmatmul.msk.f32.gmra.mxu3 %vm67_vm0, %v975_v39 }
 0x3e6   :  { %v1164_v23 = vpop.permute.xlu0 %1163 }
 0x3e7   :  { %v970_v24 = vpop.f32.mrf.mxu3 }
 0x3e8   :  { %v976_v47 = vmax.f32 %v970_v24, 0.0 }
 0x3ea   :  { %1381 = vmatmul.msk.f32.gmra.mxu3 %vm67_vm0, %v976_v47 }
 0x455   :  { %v1014_v21 = vpop.f32.mrf.mxu3 }
 0x456   :  { %v2155_v50 = vadd.f32 %v1423_v48, %v1014_v21 }
 0x458   :  { %v1075_v52 = vadd.f32 %v1064_v27, %v2155_v50 }
 0x45a   :  { %v1386_v53 = vmul.f32 -1.442695, %v1075_v52 }
 0x45c   :  { %1488 = vpow2.f32 %v1386_v53 }
 0x45d   :  { %v1017_v5 = vpop.f32.mrf.mxu3 }
 0x45e   :  { %v2158_v19 = vadd.f32 %v1423_v48, %v1017_v5 }
 0x460   :  { %v1076_v20 = vadd.f32 %v1067_v25, %v2158_v19 }
 0x462   :  { %v1489_v54 = vpop.eup %1488  ;;  %v1387_v11 = vmul.f32 -1.442695, %v1076_v20 }
 0x463   :  { %v1091_v32 = vadd.f32 1.0, %v1489_v54 }
 0x464   :  { %1490 = vpow2.f32 %v1387_v11 }
 0x465   :  { %1492 = vrcp.f32 %v1091_v32  ;;  %v1020_v49 = vpop.f32.mrf.mxu3  ;;  %v1106_v62 = vand.u32 2147483648, %v1091_v32  ;;  %v1104_v63 = vand.u32 2147483647, %v1091_v32  ;;  %vm1100_vm2 = vweird.f32 %v1091_v32 }
 0x466   :  { %v2161_v17 = vadd.f32 %v1423_v48, %v1020_v49 }
 0x467   :  { %v1107_v6 = vor.u32 1.1754944e-38, %v1106_v62  ;;  %vm1105_vm4 = vcmp.eq.f32.partialorder %v1104_v63, 8.507059e+37 }
 0x468   :  { %v1077_v56 = vadd.f32 %v1070_v46, %v2161_v17 }
 0x46a   :  { %v1491_v43 = vpop.eup %1490  ;;  %v1388_v18 = vmul.f32 -1.442695, %v1077_v56 }
 0x46b   :  { %v1493_v60 = vpop.eup %1492  ;;  %v1092_v58 = vadd.f32 1.0, %v1491_v43 }
 0x46c   :  { %1494 = vpow2.f32 %v1388_v18  ;;  %v1096_v16 = vmul.f32 %v1493_v60, %v1091_v32  ;;  %vm1101_vm1 = vweird.f32 %v1493_v60  ;;  %v1166_v32 = vpop.permute.xlu2 %1165 }
 0x46d   :  { %1496 = vrcp.f32 %v1092_v58  ;;  %v1023_v15 = vpop.f32.mrf.mxu3  ;;  %vm1102_vm3 = vmor %vm1100_vm2, %vm1101_vm1  ;;  %v1121_v10 = vand.u32 2147483648, %v1092_v58  ;;  %v1119_v37 = vand.u32 2147483647, %v1092_v58  ;;  %vm1115_vm7 = vweird.f32 %v1092_v58 }
 0x46e   :  { %v2164_v41 = vadd.f32 %v1423_v48, %v1023_v15  ;;  %v1097_v61 = vsub.f32 1.0, %v1096_v16 }
 0x46f   :  { %v1122_v44 = vor.u32 1.1754944e-38, %v1121_v10  ;;  %vm1120_vm9 = vcmp.eq.f32.partialorder %v1119_v37, 8.507059e+37 }
 0x470   :  { %v1078_v57 = vadd.f32 %v1073_v22, %v2164_v41  ;;  %v1098_v38 = vmul.f32 %v1493_v60, %v1097_v61 }
 0x472   :  { %v1495_v0 = vpop.eup %1494  ;;  %v1389_v3 = vmul.f32 -1.442695, %v1078_v57  ;;  %v1099_v14 = vadd.f32 %v1493_v60, %v1098_v38 }
 0x473   :  { %v1497_v1 = vpop.eup %1496  ;;  %v1093_v33 = vadd.f32 1.0, %v1495_v0 }
 0x474   :  { %1498 = vpow2.f32 %v1389_v3  ;;  %v1103_v7 = vsel %vm1102_vm3, %v1493_v60, %v1099_v14  ;;  %v1111_v9 = vmul.f32 %v1497_v1, %v1092_v58  ;;  %vm1116_vm6 = vweird.f32 %v1497_v1 }
 0x475   :  { %1500 = vrcp.f32 %v1093_v33  ;;  %v2167_v12 = vsel %vm1105_vm4, %v1107_v6, %v1103_v7  ;;  %vm1117_vm8 = vmor %vm1115_vm7, %vm1116_vm6  ;;  %v1136_v35 = vand.u32 2147483648, %v1093_v33  ;;  %v1134_v39 = vand.u32 2147483647, %v1093_v33 }
 0x476   :  { %v1171_v2 = vmul.f32 %v1160_v8, %v2167_v12  ;;  %v1112_v55 = vsub.f32 1.0, %v1111_v9  ;;  %vm1130_vm5 = vweird.f32 %v1093_v33  ;;  %v1199_v14 = vsub.f32 1.0, %v2167_v12 }
 0x477   :  { %v1137_v47 = vor.u32 1.1754944e-38, %v1136_v35  ;;  %vm1135_vm12 = vcmp.eq.f32.partialorder %v1134_v39, 8.507059e+37 }
 0x478   :  { %1179 = vrot.lane.b32.xlu1 %v1171_v2, %s1570_s9  ;;  %v1113_v13 = vmul.f32 %v1497_v1, %v1112_v55 }
 0x47a   :  { %v1499_v34 = vpop.eup %1498  ;;  %v1114_v42 = vadd.f32 %v1497_v1, %v1113_v13 }
 0x47b   :  { %v1501_v4 = vpop.eup %1500  ;;  %v1094_v30 = vadd.f32 1.0, %v1499_v34 }
 0x47c   :  { %v1118_v27 = vsel %vm1117_vm8, %v1497_v1, %v1114_v42  ;;  %v1126_v28 = vmul.f32 %v1501_v4, %v1093_v33  ;;  %vm1131_vm10 = vweird.f32 %v1501_v4 }
 0x47d   :  { %1502 = vrcp.f32 %v1094_v30  ;;  %v2171_v45 = vsel %vm1120_vm9, %v1122_v44, %v1118_v27  ;;  %vm1132_vm11 = vmor %vm1130_vm5, %vm1131_vm10  ;;  %v1151_v5 = vand.u32 2147483648, %v1094_v30  ;;  %v1149_v54 = vand.u32 2147483647, %v1094_v30 }
 0x47e   :  { %v1172_v59 = vmul.f32 %v1162_v29, %v2171_v45  ;;  %v1127_v25 = vsub.f32 1.0, %v1126_v28  ;;  %vm1145_vm14 = vweird.f32 %v1094_v30 }
 0x47f   :  { %v1152_v49 = vor.u32 1.1754944e-38, %v1151_v5  ;;  %vm1150_vm1 = vcmp.eq.f32.partialorder %v1149_v54, 8.507059e+37 }
 0x480   :  { %1181 = vrot.lane.b32.xlu0 %v1172_v59, %s1570_s9  ;;  %v1128_v26 = vmul.f32 %v1501_v4, %v1127_v25 }
 0x482   :  { %v1129_v46 = vadd.f32 %v1501_v4, %v1128_v26 }
 0x483   :  { %v1503_v24 = vpop.eup %1502 }
 0x484   :  { %v1133_v22 = vsel %vm1132_vm11, %v1501_v4, %v1129_v46  ;;  %v1141_v48 = vmul.f32 %v1503_v24, %v1094_v30  ;;  %vm1146_vm13 = vweird.f32 %v1503_v24 }
 0x485   :  { %v2175_v21 = vsel %vm1135_vm12, %v1137_v47, %v1133_v22  ;;  %vm1147_vm15 = vmor %vm1145_vm14, %vm1146_vm13 }
 0x486   :  { %v1173_v52 = vmul.f32 %v1164_v23, %v2175_v21  ;;  %v1142_v53 = vsub.f32 1.0, %v1141_v48 }
 0x488   :  { %1183 = vrot.lane.b32.xlu2 %v1173_v52, %s1570_s9  ;;  %v1143_v20 = vmul.f32 %v1503_v24, %v1142_v53 }
 0x48a   :  { %v1144_v11 = vadd.f32 %v1503_v24, %v1143_v20 }
 0x48c   :  { %v1148_v56 = vsel %vm1147_vm15, %v1503_v24, %v1144_v11 }
 0x48d   :  { %v1153_v43 = vsel %vm1150_vm1, %v1152_v49, %v1148_v56 }
 0x48e   :  { %v1174_v18 = vmul.f32 %v1166_v32, %v1153_v43  ;;  %v1202_v2 = vsub.f32 1.0, %v1153_v43 }
 0x490   :  { %1223 = vrot.lane.b32.xlu2 %v2106_v31, %s1571_s10  ;;  %1185 = vrot.lane.b32.xlu1 %v1174_v18, %s1570_s9 }
 0x4e2   :  { %v1184_v60 = vpop.permute.xlu2 %1183 }
 0x4e3   :  { %v1193_v58 = vadd.f32 %v1184_v60, %v2161_v17 }
 0x4e5   :  { %1504 = vtanh.f32 %v1193_v58 }
 0x4ea   :  { %v1180_v16 = vpop.permute.xlu1 %1179 }
 0x4eb   :  { %v1505_v15 = vpop.eup %1504  ;;  %v1191_v61 = vadd.f32 %v1180_v16, %v2155_v50 }
 0x4ec   :  { %1211 = vrot.lane.b32.xlu1 %v1505_v15, %s1572_s20 }
 0x4ed   :  { %1506 = vtanh.f32 %v1191_v61 }
 0x4f2   :  { %v1182_v62 = vpop.permute.xlu0 %1181 }
 0x4f3   :  { %v1507_v57 = vpop.eup %1506  ;;  %v1192_v38 = vadd.f32 %v1182_v62, %v2158_v19  ;;  %v1224_v19 = vpop.permute.xlu2 %1223 }
 0x4f4   :  { %1207 = vrot.lane.b32.xlu0 %v1507_v57, %s1572_s20  ;;  %1225 = vrot.lane.b32.xlu1 %v2118_v51, %s1571_s10  ;;  %v1200_v51 = vsub.f32 1.0, %v2171_v45  ;;  %v1235_v8 = vmul.f32 %v1224_v19, %v2167_v12  ;;  %v1201_v12 = vsub.f32 1.0, %v2175_v21 }
 0x4f5   :  { %1508 = vtanh.f32 %v1192_v38 }
 0x4fb   :  { %v1509_v31 = vpop.eup %1508 }
 0x4fc   :  { %1209 = vrot.lane.b32.xlu2 %v1509_v31, %s1572_s20 }
 0x502   :  { %v1186_v17 = vpop.permute.xlu1 %1185 }
 0x503   :  { %v1194_v63 = vadd.f32 %v1186_v17, %v2164_v41 }
 0x504   :  { %1229 = vrot.lane.b32.xlu2 %v2136_v40, %s1571_s10 }
 0x505   :  { %1510 = vtanh.f32 %v1194_v63 }
 0x50b   :  { %v1511_v50 = vpop.eup %1510 }
 0x50c   :  { %1213 = vrot.lane.b32.xlu0 %v1511_v50, %s1572_s20 }
 0x514   :  { %1227 = vrot.lane.b32.xlu0 %v2127_v36, %s1571_s10 }
 0x556   :  { %v1210_v3 = vpop.permute.xlu2 %1209 }
 0x557   :  { %v1220_v41 = vmul.f32 %v1210_v3, %v1200_v51 }
 0x55e   :  { %v1212_v0 = vpop.permute.xlu1 %1211  ;;  %v1230_v36 = vpop.permute.xlu2 %1229 }
 0x55f   :  { %v1238_v10 = vmul.f32 %v1230_v36, %v1153_v43  ;;  %v1221_v42 = vmul.f32 %v1212_v0, %v1201_v12 }
 0x566   :  { %v1208_v1 = vpop.permute.xlu0 %1207  ;;  %v1226_v33 = vpop.permute.xlu1 %1225 }
 0x567   :  { %v1219_v6 = vmul.f32 %v1208_v1, %v1199_v14  ;;  %v1236_v40 = vmul.f32 %v1226_v33, %v2171_v45 }
 0x569   :  { %v1239_v7 = vadd.f32 %v1235_v8, %v1219_v6  ;;  %v1240_v9 = vadd.f32 %v1236_v40, %v1220_v41 }
 0x56b   :  { %1247 = vrot.lane.b32.xlu1 %v1239_v7, %s1572_s20  ;;  %1249 = vrot.lane.b32.xlu0 %v1240_v9, %s1572_s20 }
 0x57e   :  { %v1214_v55 = vpop.permute.xlu0 %1213 }
 0x57f   :  { %v1222_v13 = vmul.f32 %v1214_v55, %v1202_v2 }
 0x581   :  { %v1242_v37 = vadd.f32 %v1238_v10, %v1222_v13 }
 0x583   :  { %1253 = vrot.lane.b32.xlu1 %v1242_v37, %s1572_s20 }
 0x586   :  { %v1228_v34 = vpop.permute.xlu0 %1227 }
 0x587   :  { %v1237_v4 = vmul.f32 %v1228_v34, %v2175_v21 }
 0x589   :  { %v1241_v30 = vadd.f32 %v1237_v4, %v1221_v42 }
 0x58b   :  { %1251 = vrot.lane.b32.xlu2 %v1241_v30, %s1572_s20 }
 0x5dd   :  { %v1250_v29 = vpop.permute.xlu0 %1249  ;;  %v1248_v44 = vpop.permute.xlu1 %1247 }
 0x5de   :  { %1260 = vst.msk [vmem:[#allocation7 + $0x8] sm:$0xff] %vm67_vm0, %v1250_v29 }
 0x5df   :  { %1259 = vst.msk [vmem:[#allocation7] sm:$0xff] %vm67_vm0, %v1248_v44 }
 0x5e5   :  { %v1252_v27 = vpop.permute.xlu2 %1251 }
 0x5e6   :  { %1261 = vst.msk [vmem:[#allocation7 + $0x10] sm:$0xff] %vm67_vm0, %v1252_v27 }
 0x5f5   :  { %v1254_v28 = vpop.permute.xlu1 %1253 }
 0x5f6   :  { %1262 = vst.msk [vmem:[#allocation7 + $0x18] sm:$0xff] %vm67_vm0, %v1254_v28 }
 0x5f7   :  { %1277 = dma.vmem_to_hbm [thread:$0]  %s1270_s22, 512, %s1272_s24, [#allocation6], %s1565_s15, %s1565_s15, %s1566_s16  }
 0x5f8   :  { %1562 = dma.done.wait [#allocation6], 512  }
 0x5f9   :  { %1563 = vsyncadd [#allocation6], 4294966784 }
 0x5fa   :  { %1284 = vsyncpa [#allocation5], 1 }
 0x5fb   :  { %1285 = vsyncpa [#allocation6], 1 }

</bundles_post_ra>
